<compile_context>
chip_gen: v7x
topology: tpu7x:2x2x1
jax: 0.10.0
libtpu: 0.0.40
codegen_flags: <defaults>
</compile_context>

<pallas_src>
import functools

import jax
import jax.numpy as jnp
from jax import lax
from jax.experimental import pallas as pl
from jax.experimental.pallas import tpu as pltpu

_PAD = 128  # zero padding on each side of the flat H*W axis (must be >= W + 1)


def _gather_taps(src_ref, win_ref, *, w, hw, edge_masks):
    """Write the nine 3x3-SAME shifted copies of a (C, H*W) image into win_ref.

    src_ref: (C, 2*_PAD + H*W) zero-padded flat image (real data at [_PAD, _PAD+H*W)).
    win_ref: (9*C, H*W) scratch; rows are tap-major / channel-minor, matching HWIO
             conv weights reshaped to (9*C_in, C_out).
    """
    not_left, not_right = edge_masks
    c = src_ref.shape[0]
    t = 0
    for di in (-1, 0, 1):
        for dj in (-1, 0, 1):
            tap = src_ref[:, pl.ds(_PAD + di * w + dj, hw)]
            # The flat shift already zero-fills taps that fall off the top/bottom of
            # the image (they land in the zero pad); only the left/right column wrap
            # still needs masking.
            if dj == -1:
                tap = jnp.where(not_left, tap, jnp.zeros_like(tap))
            elif dj == 1:
                tap = jnp.where(not_right, tap, jnp.zeros_like(tap))
            win_ref[t * c:(t + 1) * c, :] = tap.astype(win_ref.dtype)
            t += 1


def _fused_core_kernel(x_ref, w1t_ref, b1_ref, w2t_ref, shift2_ref, o_ref,
                       win1_ref, zpad2_ref, win2_ref, *, h, w):
    """conv3x3+bias+ReLU -> conv3x3 (BN folded) + shift + ReLU, one image per step."""
    hw = h * w
    col = lax.broadcasted_iota(jnp.int32, (1, hw), 1) % w
    edge_masks = (col >= 1, col <= w - 2)

    # ---- conv1: single K = 9*Cin contraction on the MXU (f32, tiny) ----
    _gather_taps(x_ref, win1_ref, w=w, hw=hw, edge_masks=edge_masks)
    mid = jnp.dot(w1t_ref[...], win1_ref[...],
                  preferred_element_type=jnp.float32)          # (Cmid, HW) f32
    mid = jnp.maximum(mid + b1_ref[...], 0.0)                  # bias + ReLU

    # ---- conv2: single K = 9*Cmid contraction, bf16 operands, f32 accumulation ----
    zpad2_ref[...] = jnp.zeros_like(zpad2_ref)
    zpad2_ref[:, _PAD:_PAD + hw] = mid.astype(zpad2_ref.dtype)
    _gather_taps(zpad2_ref, win2_ref, w=w, hw=hw, edge_masks=edge_masks)
    out = jnp.dot(w2t_ref[...], win2_ref[...],
                  preferred_element_type=jnp.float32)          # (Cout, HW) f32
    out = jnp.maximum(out + shift2_ref[...], 0.0)              # folded BN shift + ReLU
    o_ref[...] = out.astype(o_ref.dtype)


def transfer_learning_core_forward(x_nchw, p):
    """Forward pass. x_nchw: (N, input_channels, H, W) -> (N, 64, H, W), NCHW."""
    # greyscale -> RGB repeat (as in the PyTorch forward) when conv1 expects 3 channels
    if p["input_channels"] == 1 and p["w1"].shape[2] == 3:
        x_nchw = jnp.repeat(x_nchw, 3, axis=1)
    n, cin, h, w = x_nchw.shape
    hw = h * w
    assert w + 1 <= _PAD
    kh, kw, cin_w, cmid = p["w1"].shape
    cout = p["w2"].shape[3]
    assert cin == cin_w and (kh, kw) == (3, 3)

    # channel-major, flat-spatial layout; pad the flat axis so the kernel can read all
    # nine shifted windows with in-bounds slices (no 9x im2col copy in HBM).
    x = x_nchw.reshape(n, cin, hw).astype(jnp.float32)
    xpad = jnp.pad(x, ((0, 0), (0, 0), (_PAD, _PAD)))

    # conv1 params: transposed (Cmid, 9*Cin) weights + bias column.
    w1t = jnp.transpose(p["w1"].reshape(9 * cin, cmid)).astype(jnp.float32)
    b1 = p["b1"].reshape(cmid, 1).astype(jnp.float32)

    # conv2 params: fold the eval-mode BatchNorm scale into the weights (one-time).
    inv_std = lax.rsqrt(p["bn_var"].astype(jnp.float32) + p["bn_eps"])
    scale = p["bn_gamma"] * inv_std                              # (Cout,)
    shift = scale * (p["b2"] - p["bn_mean"]) + p["bn_beta"]
    w2_folded = p["w2"].astype(jnp.float32) * scale              # HWIO * per-Cout scale
    w2t = jnp.transpose(w2_folded.reshape(9 * cmid, cout)).astype(jnp.bfloat16)
    shift2 = shift.reshape(cout, 1).astype(jnp.float32)

    kernel = functools.partial(_fused_core_kernel, h=h, w=w)
    flops = 2 * n * hw * 9 * (cin * cmid + cmid * cout)
    bytes_accessed = (4 * xpad.size + 4 * w1t.size + 4 * b1.size
                      + 2 * w2t.size + 4 * shift2.size + 4 * n * cout * hw)

    out = pl.pallas_call(
        kernel,
        out_shape=jax.ShapeDtypeStruct((n, cout, hw), jnp.float32),
        grid_spec=pltpu.PrefetchScalarGridSpec(
            num_scalar_prefetch=0,
            grid=(n,),
            in_specs=[
                pl.BlockSpec((None, cin, 2 * _PAD + hw), lambda b: (b, 0, 0)),
                pl.BlockSpec((cmid, 9 * cin), lambda b: (0, 0)),
                pl.BlockSpec((cmid, 1), lambda b: (0, 0)),
                pl.BlockSpec((cout, 9 * cmid), lambda b: (0, 0)),
                pl.BlockSpec((cout, 1), lambda b: (0, 0)),
            ],
            out_specs=pl.BlockSpec((None, cout, hw), lambda b: (b, 0, 0)),
            scratch_shapes=[
                pltpu.VMEM((9 * cin, hw), jnp.float32),            # conv1 window stack
                pltpu.VMEM((cmid, 2 * _PAD + hw), jnp.bfloat16),   # padded conv1 activation
                pltpu.VMEM((9 * cmid, hw), jnp.bfloat16),          # conv2 window stack
            ],
        ),
        compiler_params=pltpu.CompilerParams(
            dimension_semantics=("parallel",),
            vmem_limit_bytes=32 * 1024 * 1024,
        ),
        cost_estimate=pl.CostEstimate(
            flops=flops, transcendentals=0, bytes_accessed=bytes_accessed),
    )(xpad, w1t, b1, w2t, shift2)

    # channel-major output is already NCHW-ordered: just reshape, no transpose.
    return out.reshape(n, cout, h, w)


def make_params(key, cin_conv1=3, cmid=64, cout=64):
    """Deterministic synthetic parameters matching the module's shapes."""
    ks = jax.random.split(key, 8)
    p = {
        "w1": 0.1 * jax.random.normal(ks[0], (3, 3, cin_conv1, cmid), jnp.float32),  # HWIO
        "b1": 0.1 * jax.random.normal(ks[1], (cmid,), jnp.float32),
        "w2": 0.05 * jax.random.normal(ks[2], (3, 3, cmid, cout), jnp.float32),
        "b2": 0.1 * jax.random.normal(ks[3], (cout,), jnp.float32),
        "bn_gamma": 1.0 + 0.1 * jax.random.normal(ks[4], (cout,), jnp.float32),
        "bn_beta": 0.1 * jax.random.normal(ks[5], (cout,), jnp.float32),
        "bn_mean": 0.1 * jax.random.normal(ks[6], (cout,), jnp.float32),
        "bn_var": jax.random.uniform(ks[7], (cout,), jnp.float32, 0.5, 1.5),
        "bn_eps": 1e-5,
        "input_channels": 1,
    }
    return p


def _reference_forward(x_nchw, p):
    """Pure-JAX f32 reference (lax.conv) implementing the module semantics."""
    if p["input_channels"] == 1 and p["w1"].shape[2] == 3:
        x_nchw = jnp.repeat(x_nchw, 3, axis=1)
    x = jnp.transpose(x_nchw, (0, 2, 3, 1)).astype(jnp.float32)
    dn = ("NHWC", "HWIO", "NHWC")
    conv = lambda a, wgt: lax.conv_general_dilated(
        a, wgt, (1, 1), "SAME", dimension_numbers=dn, precision=lax.Precision.HIGHEST
    )
    x = jnp.maximum(conv(x, p["w1"]) + p["b1"], 0.0)
    x = conv(x, p["w2"]) + p["b2"]
    x = p["bn_gamma"] * (x - p["bn_mean"]) / jnp.sqrt(p["bn_var"] + p["bn_eps"]) + p["bn_beta"]
    x = jnp.maximum(x, 0.0)
    return jnp.transpose(x, (0, 3, 1, 2))


if __name__ == "__main__":
    key = jax.random.PRNGKey(0)
    kx, kp = jax.random.split(key)

    N, C_in, H, W = 2, 1, 16, 16
    x = jax.random.normal(kx, (N, C_in, H, W), jnp.float32)
    params = make_params(kp)

    out = jax.block_until_ready(transfer_learning_core_forward(x, params))
    ref = _reference_forward(x, params)

    assert out.shape == (N, 64, H, W), out.shape
    # tolerance accounts for bf16 operands on the conv2 contraction (f32 accumulation)
    max_err = float(jnp.max(jnp.abs(out - ref)))
    assert jnp.allclose(out, ref, atol=2e-2, rtol=2e-2), max_err

    print("KERNEL_OK")
</pallas_src>

<mosaic_0001>
module attributes {stable_mosaic.version = 11 : i64} {
  func.func @_fused_core_kernel(%arg0: i32, %arg1: memref<1x3x512xf32, #tpu.memory_space<vmem>>, %arg2: memref<64x27xf32, #tpu.memory_space<vmem>>, %arg3: memref<64x1xf32, #tpu.memory_space<vmem>>, %arg4: memref<64x576xbf16, #tpu.memory_space<vmem>>, %arg5: memref<64x1xf32, #tpu.memory_space<vmem>>, %arg6: memref<1x64x256xf32, #tpu.memory_space<vmem>>, %arg7: memref<27x256xf32, #tpu.memory_space<vmem>>, %arg8: memref<64x512xbf16, #tpu.memory_space<vmem>>, %arg9: memref<576x256xbf16, #tpu.memory_space<vmem>>) attributes {dimension_semantics = [#tpu.dimension_semantics<parallel>], iteration_bounds = array<i64: 2>, scalar_prefetch = 0 : i64, scratch_operands = 3 : i64, tpu.core_type = #tpu.core_type<tc>, window_params = [{transform_indices = @transform_0, window_bounds = array<i64: 1, 3, 512>}, {pipeline_mode = #tpu.pipeline_mode<synchronous>, transform_indices = @transform_1, window_bounds = array<i64: 64, 27>}, {pipeline_mode = #tpu.pipeline_mode<synchronous>, transform_indices = @transform_2, window_bounds = array<i64: 64, 1>}, {pipeline_mode = #tpu.pipeline_mode<synchronous>, transform_indices = @transform_3, window_bounds = array<i64: 64, 576>}, {pipeline_mode = #tpu.pipeline_mode<synchronous>, transform_indices = @transform_4, window_bounds = array<i64: 64, 1>}, {transform_indices = @transform_5, window_bounds = array<i64: 1, 64, 256>}]} {
    %0 = tpu.iota {dimensions = array<i32: 1>} : vector<1x256xi32>
    %c16_i32 = arith.constant 16 : i32
    %c0_i32 = arith.constant 0 : i32
    %1 = arith.cmpi eq, %c16_i32, %c0_i32 : i32
    %c1_i32 = arith.constant 1 : i32
    %2 = arith.select %1, %c1_i32, %c16_i32 : i32
    %3 = vector.broadcast %2 : i32 to vector<1x256xi32>
    %4 = arith.remsi %0, %3 : vector<1x256xi32>
    %c0_i32_0 = arith.constant 0 : i32
    %5 = vector.broadcast %c0_i32_0 : i32 to vector<1x256xi32>
    %6 = arith.cmpi ne, %4, %5 : vector<1x256xi32>
    %c0_i32_1 = arith.constant 0 : i32
    %7 = vector.broadcast %c0_i32_1 : i32 to vector<1x256xi32>
    %8 = arith.cmpi slt, %4, %7 : vector<1x256xi32>
    %c0_i32_2 = arith.constant 0 : i32
    %9 = arith.cmpi slt, %2, %c0_i32_2 : i32
    %10 = vector.broadcast %9 : i1 to vector<1x256xi1>
    %11 = vector.broadcast %10 : vector<1x256xi1> to vector<1x256xi1>
    %12 = arith.xori %8, %11 : vector<1x256xi1>
    %13 = arith.andi %12, %6 : vector<1x256xi1>
    %14 = vector.broadcast %2 : i32 to vector<1x256xi32>
    %15 = arith.addi %4, %14 : vector<1x256xi32>
    %16 = arith.select %13, %15, %4 : vector<1x256xi1>, vector<1x256xi32>
    %c1_i32_3 = arith.constant 1 : i32
    %17 = vector.broadcast %c1_i32_3 : i32 to vector<1x256xi32>
    %18 = arith.cmpi sge, %16, %17 : vector<1x256xi32>
    %c14_i32 = arith.constant 14 : i32
    %19 = vector.broadcast %c14_i32 : i32 to vector<1x256xi32>
    %20 = arith.cmpi sle, %16, %19 : vector<1x256xi32>
    %c0 = arith.constant 0 : index
    %c0_4 = arith.constant 0 : index
    %c111 = arith.constant 111 : index
    %21 = vector.load %arg1[%c0, %c0_4, %c111] : memref<1x3x512xf32, #tpu.memory_space<vmem>>, vector<1x3x256xf32>
    %22 = vector.shape_cast %21 : vector<1x3x256xf32> to vector<3x256xf32>
    %cst = arith.constant 0.000000e+00 : f32
    %23 = vector.broadcast %cst : f32 to vector<3x256xf32>
    %24 = vector.shape_cast %18 : vector<1x256xi1> to vector<1x256xi1>
    %25 = vector.broadcast %24 : vector<1x256xi1> to vector<3x256xi1>
    %26 = arith.select %25, %22, %23 : vector<3x256xi1>, vector<3x256xf32>
    %c0_5 = arith.constant 0 : index
    %c0_6 = arith.constant 0 : index
    %27 = vector.load %arg7[%c0_5, %c0_6] : memref<27x256xf32, #tpu.memory_space<vmem>>, vector<3x256xf32>
    tpu.vector_store %arg7[%c0_5, %c0_6], %26 {strides = array<i32>} : memref<27x256xf32, #tpu.memory_space<vmem>>, vector<3x256xf32>,
    %c0_7 = arith.constant 0 : index
    %c0_8 = arith.constant 0 : index
    %c112 = arith.constant 112 : index
    %28 = vector.load %arg1[%c0_7, %c0_8, %c112] : memref<1x3x512xf32, #tpu.memory_space<vmem>>, vector<1x3x256xf32>
    %29 = vector.shape_cast %28 : vector<1x3x256xf32> to vector<3x256xf32>
    %c3 = arith.constant 3 : index
    %c0_9 = arith.constant 0 : index
    %30 = vector.load %arg7[%c3, %c0_9] : memref<27x256xf32, #tpu.memory_space<vmem>>, vector<3x256xf32>
    tpu.vector_store %arg7[%c3, %c0_9], %29 {strides = array<i32>} : memref<27x256xf32, #tpu.memory_space<vmem>>, vector<3x256xf32>,
    %c0_10 = arith.constant 0 : index
    %c0_11 = arith.constant 0 : index
    %c113 = arith.constant 113 : index
    %31 = vector.load %arg1[%c0_10, %c0_11, %c113] : memref<1x3x512xf32, #tpu.memory_space<vmem>>, vector<1x3x256xf32>
    %32 = vector.shape_cast %31 : vector<1x3x256xf32> to vector<3x256xf32>
    %cst_12 = arith.constant 0.000000e+00 : f32
    %33 = vector.broadcast %cst_12 : f32 to vector<3x256xf32>
    %34 = vector.shape_cast %20 : vector<1x256xi1> to vector<1x256xi1>
    %35 = vector.broadcast %34 : vector<1x256xi1> to vector<3x256xi1>
    %36 = arith.select %35, %32, %33 : vector<3x256xi1>, vector<3x256xf32>
    %c6 = arith.constant 6 : index
    %c0_13 = arith.constant 0 : index
    %37 = vector.load %arg7[%c6, %c0_13] : memref<27x256xf32, #tpu.memory_space<vmem>>, vector<3x256xf32>
    tpu.vector_store %arg7[%c6, %c0_13], %36 {strides = array<i32>} : memref<27x256xf32, #tpu.memory_space<vmem>>, vector<3x256xf32>,
    %c0_14 = arith.constant 0 : index
    %c0_15 = arith.constant 0 : index
    %c127 = arith.constant 127 : index
    %38 = vector.load %arg1[%c0_14, %c0_15, %c127] : memref<1x3x512xf32, #tpu.memory_space<vmem>>, vector<1x3x256xf32>
    %39 = vector.shape_cast %38 : vector<1x3x256xf32> to vector<3x256xf32>
    %cst_16 = arith.constant 0.000000e+00 : f32
    %40 = vector.broadcast %cst_16 : f32 to vector<3x256xf32>
    %41 = vector.shape_cast %18 : vector<1x256xi1> to vector<1x256xi1>
    %42 = vector.broadcast %41 : vector<1x256xi1> to vector<3x256xi1>
    %43 = arith.select %42, %39, %40 : vector<3x256xi1>, vector<3x256xf32>
    %c9 = arith.constant 9 : index
    %c0_17 = arith.constant 0 : index
    %44 = vector.load %arg7[%c9, %c0_17] : memref<27x256xf32, #tpu.memory_space<vmem>>, vector<3x256xf32>
    tpu.vector_store %arg7[%c9, %c0_17], %43 {strides = array<i32>} : memref<27x256xf32, #tpu.memory_space<vmem>>, vector<3x256xf32>,
    %c0_18 = arith.constant 0 : index
    %c0_19 = arith.constant 0 : index
    %c128 = arith.constant 128 : index
    %45 = vector.load %arg1[%c0_18, %c0_19, %c128] : memref<1x3x512xf32, #tpu.memory_space<vmem>>, vector<1x3x256xf32>
    %46 = vector.shape_cast %45 : vector<1x3x256xf32> to vector<3x256xf32>
    %c12 = arith.constant 12 : index
    %c0_20 = arith.constant 0 : index
    %47 = vector.load %arg7[%c12, %c0_20] : memref<27x256xf32, #tpu.memory_space<vmem>>, vector<3x256xf32>
    tpu.vector_store %arg7[%c12, %c0_20], %46 {strides = array<i32>} : memref<27x256xf32, #tpu.memory_space<vmem>>, vector<3x256xf32>,
    %c0_21 = arith.constant 0 : index
    %c0_22 = arith.constant 0 : index
    %c129 = arith.constant 129 : index
    %48 = vector.load %arg1[%c0_21, %c0_22, %c129] : memref<1x3x512xf32, #tpu.memory_space<vmem>>, vector<1x3x256xf32>
    %49 = vector.shape_cast %48 : vector<1x3x256xf32> to vector<3x256xf32>
    %cst_23 = arith.constant 0.000000e+00 : f32
    %50 = vector.broadcast %cst_23 : f32 to vector<3x256xf32>
    %51 = vector.shape_cast %20 : vector<1x256xi1> to vector<1x256xi1>
    %52 = vector.broadcast %51 : vector<1x256xi1> to vector<3x256xi1>
    %53 = arith.select %52, %49, %50 : vector<3x256xi1>, vector<3x256xf32>
    %c15 = arith.constant 15 : index
    %c0_24 = arith.constant 0 : index
    %54 = vector.load %arg7[%c15, %c0_24] : memref<27x256xf32, #tpu.memory_space<vmem>>, vector<3x256xf32>
    tpu.vector_store %arg7[%c15, %c0_24], %53 {strides = array<i32>} : memref<27x256xf32, #tpu.memory_space<vmem>>, vector<3x256xf32>,
    %c0_25 = arith.constant 0 : index
    %c0_26 = arith.constant 0 : index
    %c143 = arith.constant 143 : index
    %55 = vector.load %arg1[%c0_25, %c0_26, %c143] : memref<1x3x512xf32, #tpu.memory_space<vmem>>, vector<1x3x256xf32>
    %56 = vector.shape_cast %55 : vector<1x3x256xf32> to vector<3x256xf32>
    %cst_27 = arith.constant 0.000000e+00 : f32
    %57 = vector.broadcast %cst_27 : f32 to vector<3x256xf32>
    %58 = vector.shape_cast %18 : vector<1x256xi1> to vector<1x256xi1>
    %59 = vector.broadcast %58 : vector<1x256xi1> to vector<3x256xi1>
    %60 = arith.select %59, %56, %57 : vector<3x256xi1>, vector<3x256xf32>
    %c18 = arith.constant 18 : index
    %c0_28 = arith.constant 0 : index
    %61 = vector.load %arg7[%c18, %c0_28] : memref<27x256xf32, #tpu.memory_space<vmem>>, vector<3x256xf32>
    tpu.vector_store %arg7[%c18, %c0_28], %60 {strides = array<i32>} : memref<27x256xf32, #tpu.memory_space<vmem>>, vector<3x256xf32>,
    %c0_29 = arith.constant 0 : index
    %c0_30 = arith.constant 0 : index
    %c144 = arith.constant 144 : index
    %62 = vector.load %arg1[%c0_29, %c0_30, %c144] : memref<1x3x512xf32, #tpu.memory_space<vmem>>, vector<1x3x256xf32>
    %63 = vector.shape_cast %62 : vector<1x3x256xf32> to vector<3x256xf32>
    %c21 = arith.constant 21 : index
    %c0_31 = arith.constant 0 : index
    %64 = vector.load %arg7[%c21, %c0_31] : memref<27x256xf32, #tpu.memory_space<vmem>>, vector<3x256xf32>
    tpu.vector_store %arg7[%c21, %c0_31], %63 {strides = array<i32>} : memref<27x256xf32, #tpu.memory_space<vmem>>, vector<3x256xf32>,
    %c0_32 = arith.constant 0 : index
    %c0_33 = arith.constant 0 : index
    %c145 = arith.constant 145 : index
    %65 = vector.load %arg1[%c0_32, %c0_33, %c145] : memref<1x3x512xf32, #tpu.memory_space<vmem>>, vector<1x3x256xf32>
    %66 = vector.shape_cast %65 : vector<1x3x256xf32> to vector<3x256xf32>
    %cst_34 = arith.constant 0.000000e+00 : f32
    %67 = vector.broadcast %cst_34 : f32 to vector<3x256xf32>
    %68 = vector.shape_cast %20 : vector<1x256xi1> to vector<1x256xi1>
    %69 = vector.broadcast %68 : vector<1x256xi1> to vector<3x256xi1>
    %70 = arith.select %69, %66, %67 : vector<3x256xi1>, vector<3x256xf32>
    %c24 = arith.constant 24 : index
    %c0_35 = arith.constant 0 : index
    %71 = vector.load %arg7[%c24, %c0_35] : memref<27x256xf32, #tpu.memory_space<vmem>>, vector<3x256xf32>
    tpu.vector_store %arg7[%c24, %c0_35], %70 {strides = array<i32>} : memref<27x256xf32, #tpu.memory_space<vmem>>, vector<3x256xf32>,
    %c0_36 = arith.constant 0 : index
    %c0_37 = arith.constant 0 : index
    %72 = vector.load %arg2[%c0_36, %c0_37] : memref<64x27xf32, #tpu.memory_space<vmem>>, vector<64x27xf32>
    %c0_38 = arith.constant 0 : index
    %c0_39 = arith.constant 0 : index
    %73 = vector.load %arg7[%c0_38, %c0_39] : memref<27x256xf32, #tpu.memory_space<vmem>>, vector<27x256xf32>
    %cst_40 = arith.constant dense<0.000000e+00> : vector<64x256xf32>
    %74 = tpu.matmul %72, %73, %cst_40 {dimension_numbers = #tpu.dot_dimension_numbers<[1], [0], [0], [1], [0, 0, 1, 1], [], []>} : vector<64x27xf32>, vector<27x256xf32>, vector<64x256xf32> -> vector<64x256xf32>
    %c0_41 = arith.constant 0 : index
    %c0_42 = arith.constant 0 : index
    %75 = vector.load %arg3[%c0_41, %c0_42] : memref<64x1xf32, #tpu.memory_space<vmem>>, vector<64x1xf32>
    %76 = vector.broadcast %75 : vector<64x1xf32> to vector<64x256xf32>
    %77 = arith.addf %74, %76 : vector<64x256xf32>
    %cst_43 = arith.constant 0.000000e+00 : f32
    %78 = vector.broadcast %cst_43 : f32 to vector<64x256xf32>
    %79 = arith.maximumf %77, %78 : vector<64x256xf32>
    %cst_44 = arith.constant 0.000000e+00 : bf16
    %80 = vector.broadcast %cst_44 : bf16 to vector<64x512xbf16>
    %c0_45 = arith.constant 0 : index
    %c0_46 = arith.constant 0 : index
    %81 = vector.load %arg8[%c0_45, %c0_46] : memref<64x512xbf16, #tpu.memory_space<vmem>>, vector<64x512xbf16>
    tpu.vector_store %arg8[%c0_45, %c0_46], %80 {strides = array<i32>} : memref<64x512xbf16, #tpu.memory_space<vmem>>, vector<64x512xbf16>,
    %82 = arith.truncf %79 : vector<64x256xf32> to vector<64x256xbf16>
    %c0_47 = arith.constant 0 : index
    %c128_48 = arith.constant 128 : index
    %83 = vector.load %arg8[%c0_47, %c128_48] : memref<64x512xbf16, #tpu.memory_space<vmem>>, vector<64x256xbf16>
    tpu.vector_store %arg8[%c0_47, %c128_48], %82 {strides = array<i32>} : memref<64x512xbf16, #tpu.memory_space<vmem>>, vector<64x256xbf16>,
    %c0_49 = arith.constant 0 : index
    %c111_50 = arith.constant 111 : index
    %84 = vector.load %arg8[%c0_49, %c111_50] : memref<64x512xbf16, #tpu.memory_space<vmem>>, vector<64x256xbf16>
    %cst_51 = arith.constant 0.000000e+00 : bf16
    %85 = vector.broadcast %cst_51 : bf16 to vector<64x256xbf16>
    %86 = vector.shape_cast %18 : vector<1x256xi1> to vector<1x256xi1>
    %87 = vector.broadcast %86 : vector<1x256xi1> to vector<64x256xi1>
    %88 = arith.select %87, %84, %85 : vector<64x256xi1>, vector<64x256xbf16>
    %c0_52 = arith.constant 0 : index
    %c0_53 = arith.constant 0 : index
    %89 = vector.load %arg9[%c0_52, %c0_53] : memref<576x256xbf16, #tpu.memory_space<vmem>>, vector<64x256xbf16>
    tpu.vector_store %arg9[%c0_52, %c0_53], %88 {strides = array<i32>} : memref<576x256xbf16, #tpu.memory_space<vmem>>, vector<64x256xbf16>,
    %c0_54 = arith.constant 0 : index
    %c112_55 = arith.constant 112 : index
    %90 = vector.load %arg8[%c0_54, %c112_55] : memref<64x512xbf16, #tpu.memory_space<vmem>>, vector<64x256xbf16>
    %c64 = arith.constant 64 : index
    %c0_56 = arith.constant 0 : index
    %91 = vector.load %arg9[%c64, %c0_56] : memref<576x256xbf16, #tpu.memory_space<vmem>>, vector<64x256xbf16>
    tpu.vector_store %arg9[%c64, %c0_56], %90 {strides = array<i32>} : memref<576x256xbf16, #tpu.memory_space<vmem>>, vector<64x256xbf16>,
    %c0_57 = arith.constant 0 : index
    %c113_58 = arith.constant 113 : index
    %92 = vector.load %arg8[%c0_57, %c113_58] : memref<64x512xbf16, #tpu.memory_space<vmem>>, vector<64x256xbf16>
    %cst_59 = arith.constant 0.000000e+00 : bf16
    %93 = vector.broadcast %cst_59 : bf16 to vector<64x256xbf16>
    %94 = vector.shape_cast %20 : vector<1x256xi1> to vector<1x256xi1>
    %95 = vector.broadcast %94 : vector<1x256xi1> to vector<64x256xi1>
    %96 = arith.select %95, %92, %93 : vector<64x256xi1>, vector<64x256xbf16>
    %c128_60 = arith.constant 128 : index
    %c0_61 = arith.constant 0 : index
    %97 = vector.load %arg9[%c128_60, %c0_61] : memref<576x256xbf16, #tpu.memory_space<vmem>>, vector<64x256xbf16>
    tpu.vector_store %arg9[%c128_60, %c0_61], %96 {strides = array<i32>} : memref<576x256xbf16, #tpu.memory_space<vmem>>, vector<64x256xbf16>,
    %c0_62 = arith.constant 0 : index
    %c127_63 = arith.constant 127 : index
    %98 = vector.load %arg8[%c0_62, %c127_63] : memref<64x512xbf16, #tpu.memory_space<vmem>>, vector<64x256xbf16>
    %cst_64 = arith.constant 0.000000e+00 : bf16
    %99 = vector.broadcast %cst_64 : bf16 to vector<64x256xbf16>
    %100 = vector.shape_cast %18 : vector<1x256xi1> to vector<1x256xi1>
    %101 = vector.broadcast %100 : vector<1x256xi1> to vector<64x256xi1>
    %102 = arith.select %101, %98, %99 : vector<64x256xi1>, vector<64x256xbf16>
    %c192 = arith.constant 192 : index
    %c0_65 = arith.constant 0 : index
    %103 = vector.load %arg9[%c192, %c0_65] : memref<576x256xbf16, #tpu.memory_space<vmem>>, vector<64x256xbf16>
    tpu.vector_store %arg9[%c192, %c0_65], %102 {strides = array<i32>} : memref<576x256xbf16, #tpu.memory_space<vmem>>, vector<64x256xbf16>,
    %c0_66 = arith.constant 0 : index
    %c128_67 = arith.constant 128 : index
    %104 = vector.load %arg8[%c0_66, %c128_67] : memref<64x512xbf16, #tpu.memory_space<vmem>>, vector<64x256xbf16>
    %c256 = arith.constant 256 : index
    %c0_68 = arith.constant 0 : index
    %105 = vector.load %arg9[%c256, %c0_68] : memref<576x256xbf16, #tpu.memory_space<vmem>>, vector<64x256xbf16>
    tpu.vector_store %arg9[%c256, %c0_68], %104 {strides = array<i32>} : memref<576x256xbf16, #tpu.memory_space<vmem>>, vector<64x256xbf16>,
    %c0_69 = arith.constant 0 : index
    %c129_70 = arith.constant 129 : index
    %106 = vector.load %arg8[%c0_69, %c129_70] : memref<64x512xbf16, #tpu.memory_space<vmem>>, vector<64x256xbf16>
    %cst_71 = arith.constant 0.000000e+00 : bf16
    %107 = vector.broadcast %cst_71 : bf16 to vector<64x256xbf16>
    %108 = vector.shape_cast %20 : vector<1x256xi1> to vector<1x256xi1>
    %109 = vector.broadcast %108 : vector<1x256xi1> to vector<64x256xi1>
    %110 = arith.select %109, %106, %107 : vector<64x256xi1>, vector<64x256xbf16>
    %c320 = arith.constant 320 : index
    %c0_72 = arith.constant 0 : index
    %111 = vector.load %arg9[%c320, %c0_72] : memref<576x256xbf16, #tpu.memory_space<vmem>>, vector<64x256xbf16>
    tpu.vector_store %arg9[%c320, %c0_72], %110 {strides = array<i32>} : memref<576x256xbf16, #tpu.memory_space<vmem>>, vector<64x256xbf16>,
    %c0_73 = arith.constant 0 : index
    %c143_74 = arith.constant 143 : index
    %112 = vector.load %arg8[%c0_73, %c143_74] : memref<64x512xbf16, #tpu.memory_space<vmem>>, vector<64x256xbf16>
    %cst_75 = arith.constant 0.000000e+00 : bf16
    %113 = vector.broadcast %cst_75 : bf16 to vector<64x256xbf16>
    %114 = vector.shape_cast %18 : vector<1x256xi1> to vector<1x256xi1>
    %115 = vector.broadcast %114 : vector<1x256xi1> to vector<64x256xi1>
    %116 = arith.select %115, %112, %113 : vector<64x256xi1>, vector<64x256xbf16>
    %c384 = arith.constant 384 : index
    %c0_76 = arith.constant 0 : index
    %117 = vector.load %arg9[%c384, %c0_76] : memref<576x256xbf16, #tpu.memory_space<vmem>>, vector<64x256xbf16>
    tpu.vector_store %arg9[%c384, %c0_76], %116 {strides = array<i32>} : memref<576x256xbf16, #tpu.memory_space<vmem>>, vector<64x256xbf16>,
    %c0_77 = arith.constant 0 : index
    %c144_78 = arith.constant 144 : index
    %118 = vector.load %arg8[%c0_77, %c144_78] : memref<64x512xbf16, #tpu.memory_space<vmem>>, vector<64x256xbf16>
    %c448 = arith.constant 448 : index
    %c0_79 = arith.constant 0 : index
    %119 = vector.load %arg9[%c448, %c0_79] : memref<576x256xbf16, #tpu.memory_space<vmem>>, vector<64x256xbf16>
    tpu.vector_store %arg9[%c448, %c0_79], %118 {strides = array<i32>} : memref<576x256xbf16, #tpu.memory_space<vmem>>, vector<64x256xbf16>,
    %c0_80 = arith.constant 0 : index
    %c145_81 = arith.constant 145 : index
    %120 = vector.load %arg8[%c0_80, %c145_81] : memref<64x512xbf16, #tpu.memory_space<vmem>>, vector<64x256xbf16>
    %cst_82 = arith.constant 0.000000e+00 : bf16
    %121 = vector.broadcast %cst_82 : bf16 to vector<64x256xbf16>
    %122 = vector.shape_cast %20 : vector<1x256xi1> to vector<1x256xi1>
    %123 = vector.broadcast %122 : vector<1x256xi1> to vector<64x256xi1>
    %124 = arith.select %123, %120, %121 : vector<64x256xi1>, vector<64x256xbf16>
    %c512 = arith.constant 512 : index
    %c0_83 = arith.constant 0 : index
    %125 = vector.load %arg9[%c512, %c0_83] : memref<576x256xbf16, #tpu.memory_space<vmem>>, vector<64x256xbf16>
    tpu.vector_store %arg9[%c512, %c0_83], %124 {strides = array<i32>} : memref<576x256xbf16, #tpu.memory_space<vmem>>, vector<64x256xbf16>,
    %c0_84 = arith.constant 0 : index
    %c0_85 = arith.constant 0 : index
    %126 = vector.load %arg4[%c0_84, %c0_85] : memref<64x576xbf16, #tpu.memory_space<vmem>>, vector<64x576xbf16>
    %c0_86 = arith.constant 0 : index
    %c0_87 = arith.constant 0 : index
    %127 = vector.load %arg9[%c0_86, %c0_87] : memref<576x256xbf16, #tpu.memory_space<vmem>>, vector<576x256xbf16>
    %cst_88 = arith.constant dense<0.000000e+00> : vector<64x256xf32>
    %128 = tpu.matmul %126, %127, %cst_88 {dimension_numbers = #tpu.dot_dimension_numbers<[1], [0], [0], [1], [0, 0, 1, 1], [], []>} : vector<64x576xbf16>, vector<576x256xbf16>, vector<64x256xf32> -> vector<64x256xf32>
    %c0_89 = arith.constant 0 : index
    %c0_90 = arith.constant 0 : index
    %129 = vector.load %arg5[%c0_89, %c0_90] : memref<64x1xf32, #tpu.memory_space<vmem>>, vector<64x1xf32>
    %130 = vector.broadcast %129 : vector<64x1xf32> to vector<64x256xf32>
    %131 = arith.addf %128, %130 : vector<64x256xf32>
    %cst_91 = arith.constant 0.000000e+00 : f32
    %132 = vector.broadcast %cst_91 : f32 to vector<64x256xf32>
    %133 = arith.maximumf %131, %132 : vector<64x256xf32>
    %c0_92 = arith.constant 0 : index
    %c0_93 = arith.constant 0 : index
    %c0_94 = arith.constant 0 : index
    %134 = vector.load %arg6[%c0_92, %c0_93, %c0_94] : memref<1x64x256xf32, #tpu.memory_space<vmem>>, vector<1x64x256xf32>
    %135 = vector.shape_cast %134 : vector<1x64x256xf32> to vector<64x256xf32>
    %136 = vector.shape_cast %133 : vector<64x256xf32> to vector<1x64x256xf32>
    tpu.vector_store %arg6[%c0_92, %c0_93, %c0_94], %136 {strides = array<i32>} : memref<1x64x256xf32, #tpu.memory_space<vmem>>, vector<1x64x256xf32>,
    return
  }
  func.func @transform_0(%arg0: i32) -> (i32, i32, i32) {
    %c0_i32 = arith.constant 0 : i32
    %c0_i32_0 = arith.constant 0 : i32
    %c0_i32_1 = arith.constant 0 : i32
    return %arg0, %c0_i32, %c0_i32_0 : i32, i32, i32
  }
  func.func @transform_1(%arg0: i32) -> (i32, i32) {
    %c0_i32 = arith.constant 0 : i32
    %c0_i32_0 = arith.constant 0 : i32
    %c0_i32_1 = arith.constant 0 : i32
    return %c0_i32, %c0_i32_0 : i32, i32
  }
  func.func @transform_2(%arg0: i32) -> (i32, i32) {
    %c0_i32 = arith.constant 0 : i32
    %c0_i32_0 = arith.constant 0 : i32
    %c0_i32_1 = arith.constant 0 : i32
    return %c0_i32, %c0_i32_0 : i32, i32
  }
  func.func @transform_3(%arg0: i32) -> (i32, i32) {
    %c0_i32 = arith.constant 0 : i32
    %c0_i32_0 = arith.constant 0 : i32
    %c0_i32_1 = arith.constant 0 : i32
    return %c0_i32, %c0_i32_0 : i32, i32
  }
  func.func @transform_4(%arg0: i32) -> (i32, i32) {
    %c0_i32 = arith.constant 0 : i32
    %c0_i32_0 = arith.constant 0 : i32
    %c0_i32_1 = arith.constant 0 : i32
    return %c0_i32, %c0_i32_0 : i32, i32
  }
  func.func @transform_5(%arg0: i32) -> (i32, i32, i32) {
    %c0_i32 = arith.constant 0 : i32
    %c0_i32_0 = arith.constant 0 : i32
    %c0_i32_1 = arith.constant 0 : i32
    return %arg0, %c0_i32, %c0_i32_0 : i32, i32, i32
  }
}

</mosaic_0001>

<bundles_post_ra>
// kernel: tpu_custom_call.1
= control target key start
LH: loop header
LB: loop body
LE: loop exit
PB: predicated region body
PF: predicated region fallthrough
CT: control target
= control target key end

     0   :  { %10 = vsyncpa [#allocation6], 0  ;;  %s3346_s0 = inlined_call_operand.vmem [shape: f32[2,3,512], index: 0, kind: input, shape index: {}]   ;;  %s3347_s1 = inlined_call_operand.vmem [shape: f32[64,27], index: 1, kind: input, shape index: {}]   ;;  %s3348_s2 = inlined_call_operand.vmem [shape: f32[64,1], index: 2, kind: input, shape index: {}]   ;;  %s3349_s3 = inlined_call_operand.vmem [shape: bf16[64,576], index: 3, kind: input, shape index: {}]   ;;  %s3350_s4 = inlined_call_operand.vmem [shape: f32[64,1], index: 4, kind: input, shape index: {}]   ;;  %s3351_s5 = inlined_call_operand.hbm [shape: f32[2,64,256], index: 5, kind: output, shape index: {}]  }
   0x1   :  { %12 = vsyncpa [#allocation6 + $0x1], 0  ;;  %s2428_s18 = smov 0   ;;  %s2430_s19 = smov 0  }
   0x2   :  { %s2432_s20 = smov 0   ;;  %s2434_s21 = smov 0  }
   0x3 LB: > { %s2449_s22 = sadd.s32 4294967295, %s2383_s21   ;;  %s2042_s23 = sadd.s32 4294967294, %s2383_s21   ;;  %s2383_s21 = sphi %s2434_s21, %s3365_s21   ;;  %s2379_s20 = sphi %s2432_s20, %s3364_s20   ;;  %s2375_s19 = sphi %s2430_s19, %s3363_s19   ;;  %s2371_s18 = sphi %s2428_s18, %s3362_s18  }
   0x4   : > { %s2453_s24 = sadd.s32 1, %s2383_s21   ;;  %s135_s25 = sadd.s32 1, %s2379_s20 }
   0x5   : > { %s132_s26 = ssub.s32 %s2383_s21, %s2453_s24  ;;  %p145_p0 = scmp.ne.s32.totalorder %s2379_s20, %s2375_s19 }
   0x6   : > { %p133_p1 = scmp.eq.s32.totalorder %s132_s26, 0  ;;  %p146_p2 = scmp.eq.s32.totalorder %s2449_s22, 1 }
   0x7   : > { %p151_p3 = scmp.ne.s32.totalorder %s2375_s19, %s2371_s18  ;;  %p152_p4 = scmp.eq.s32.totalorder %s2042_s23, 1 }
   0x8   : > { %s2464_s27 = scalar_select %p133_p1, %s2379_s20, %s135_s25  }
   0x9   : > { %p2466_p5 = por %p146_p2, %p145_p0  ;;  %p2470_p6 = por %p152_p4, %p151_p3 }
   0xa   : > { %p2045_p7 = scmp.ge.s32.totalorder %s2383_s21, 1  ;;  %p190_p8 = scmp.lt.s32.totalorder %s2383_s21, 3 }
   0xc   : > { %p191_p9 = pnand %p2045_p7, %p190_p8 }
   0xd   : > { %p218_p10 = scmp.lt.s32.totalorder (!%p191_p9), %s2449_s22, 1  ;;  %s2385_s10 = smov (!%p191_p9), 1   ;;  %v2393_v32 = vmov (!%p191_p9), 0.0   ;;  %v226_v33 = vlaneseq (!%p191_p9)  ;;  %v477_v37 = vld [vmem:[%s3348_s2] sm:$0xff] (!%p191_p9)  ;;  %v478_v38 = vld [vmem:[%s3348_s2 + $0x8] sm:$0xff] (!%p191_p9)  ;;  %v2394_v40 = vmov (!%p191_p9), 0  }
   0xe   : > { %194 = sbr.rel (%p191_p9) target bundleno = 932 (0x3a4), region = 40  ;;  %s2386_s11 = smov (!%p191_p9), 15   ;;  %621 = vmatprep.mubr.f32.mxu0 (!%p191_p9), %v2393_v32  ;;  %2208 = vset.pattern.permute.xlu1 (!%p191_p9), %v2394_v40  ;;  %v480_v44 = vld [vmem:[%s3348_s2 + $0x18] sm:$0xff] (!%p191_p9)  ;;  %v479_v45 = vld [vmem:[%s3348_s2 + $0x10] sm:$0xff] (!%p191_p9)  ;;  %v482_v50 = vld [vmem:[%s3348_s2 + $0x28] sm:$0xff] (!%p191_p9)  ;;  %vm317_vm6 = vcmask (!%p191_p9), 121856  }
   0xf   : > { %s2387_s12 = smov (!%p191_p9), 127   ;;  %s2388_s13 = smov (!%p191_p9), 17   ;;  %v227_v34 = vand.u32 (!%p191_p9), 127, %v226_v33  ;;  %2207 = vset.pattern.permute.xlu0 (!%p191_p9), %v2394_v40  ;;  %v733_v41 = vshrl.u32 (!%p191_p9), %v226_v33, 7  ;;  %v481_v51 = vld [vmem:[%s3348_s2 + $0x20] sm:$0xff] (!%p191_p9)  ;;  %v484_v58 = vld [vmem:[%s3348_s2 + $0x38] sm:$0xff] (!%p191_p9) }
  0x10   : > { %s2389_s14 = smov (!%p191_p9), 16   ;;  %s2390_s15 = smov (!%p191_p9), 113   ;;  %v483_v59 = vld [vmem:[%s3348_s2 + $0x30] sm:$0xff] (!%p191_p9)  ;;  %vm345_vm7 = vcmask (!%p191_p9), 7168   ;;  %vm377_vm8 = vcmask (!%p191_p9), 1039360   ;;  %vm272_vm9 = vcmask (!%p191_p9), 138240  }
  0x11   : > { %s2391_s16 = smov (!%p191_p9), 111   ;;  %s2392_s17 = smov (!%p191_p9), 112   ;;  %v228_v35 = vadd.s32 (!%p191_p9), 128, %v227_v34  ;;  %v233_v36 = vand.u32 (!%p191_p9), 15, %v227_v34  ;;  %v738_v46 = vsub.s32 (!%p191_p9), 4, %v733_v41  ;;  %v734_v47 = vsub.s32 (!%p191_p9), 0, %v733_v41 }
  0x12   : > { %vm295_vm10 = vcmask (!%p191_p9), 130048   ;;  %vm405_vm11 = vcmask (!%p191_p9), 924672   ;;  %vm452_vm12 = vcmask (!%p191_p9), 908288   ;;  %vm434_vm13 = vcmask (!%p191_p9), 916480   ;;  %v462_v49 = vld [vmem:[%s3347_s1 + $0x8] sm:$0xff] (!%p191_p9)  ;;  %s215_s7 = sand.u32 (!%p191_p9), 1, %s2375_s19  }
  0x13   : > { %v240_v39 = vand.u32 (!%p191_p9), 15, %v228_v35  ;;  %vm2537_vm1 = vcmp.ge.s32.totalorder (!%p191_p9), %v233_v36, 1  ;;  %vm2555_vm4 = vcmp.le.s32.totalorder (!%p191_p9), %v233_v36, 14  ;;  %vm550_vm14 = vcmask (!%p191_p9), 1042432   ;;  %s2046_s8 = sshll.u32 (!%p191_p9), %s215_s7, 7 }
  0x14   : > { %vm2395_vm15 = vmmov (!%p191_p9), 1  }
  0x15   : > { %s219_s30 = scalar_select %p218_p10, %s2449_s22, 1  ;;  %vm2533_vm0 = vcmp.ge.s32.totalorder %v240_v39, 1  ;;  %vm2551_vm3 = vcmp.le.s32.totalorder %v240_v39, 14 }
  0x16   : > { %vm730_vm2 = vmpackc.low %vm2533_vm0, %vm2537_vm1 }
  0x17   : > { %s2088_s6 = sshll.u32 %s219_s30, 4  ;;  %v731_v52 = vsel %vm730_vm2, 65537, %v2394_v40  ;;  %vm907_vm5 = vmpackc.low %vm2551_vm3, %vm2555_vm4 }
  0x18   : > { %s2481_s9 = scalar_lea.vmem %s3346_s0, %s2088_s6  ;;  %v739_v53 = vrot.slane %v731_v52, %v738_v46  ;;  %v735_v54 = vrot.slane %v731_v52, %v734_v47  ;;  %v908_v55 = vsel %vm907_vm5, 65537, %v2394_v40 }
  0x19   : > { %v335_v0 = vld [vmem:[%s2481_s9 + $0x8] sm:$0x7]  ;;  %v302_v2 = vld [vmem:[%s2481_s9] sm:$0x77]  ;;  %v367_v3 = vld [vmem:[%s2481_s9 + $0xc] sm:$0x7]  ;;  %v916_v56 = vrot.slane %v908_v55, %v738_v46  ;;  %v912_v57 = vrot.slane %v908_v55, %v734_v47 }
  0x1a   : > { %v303_v1 = vld [vmem:[%s2481_s9 + $0x8] sm:$0x7]  ;;  %343 = vrot.lane.b32.xlu1 %v335_v0, %s2385_s10  ;;  %v310_v4 = vcombine.high %v302_v2, %v302_v2  ;;  %v334_v5 = vld [vmem:[%s2481_s9] sm:$0x77]  ;;  %v395_v22 = vld [vmem:[%s2481_s9 + $0xc] sm:$0x7] }
  0x1b   : > { %315 = vrot.lane.b32.xlu0 %v303_v1, %s2386_s11  ;;  %v366_v6 = vld [vmem:[%s2481_s9 + $0x4] sm:$0x77]  ;;  %v338_v7 = vcombine.high %v334_v5, %v334_v5  ;;  %v442_v27 = vld [vmem:[%s2481_s9 + $0xc] sm:$0x7] }
  0x1c   : > { %v370_v8 = vcombine.high %v366_v6, %v366_v6  ;;  %v360_v9 = vld [vmem:[%s2481_s9 + $0x4] sm:$0x77]  ;;  %v421_v28 = vld [vmem:[%s2481_s9 + $0xc] sm:$0x7] }
  0x1d   : > { %365 = vst [vmem:[#allocation2 + $0x18] sm:$0x70] %v360_v9  ;;  %v362_v10 = vcombine.low %v360_v9, %v360_v9  ;;  %v257_v11 = vld [vmem:[%s2481_s9] sm:$0x77]  ;;  %v258_v15 = vld [vmem:[%s2481_s9 + $0x8] sm:$0x7] }
  0x1e   : > { %375 = vrot.lane.b32.xlu1 %v367_v3, %s2387_s12  ;;  %v265_v12 = vcombine.high %v257_v11, %v257_v11  ;;  %v281_v13 = vld [vmem:[%s2481_s9] sm:$0x77]  ;;  %v282_v16 = vld [vmem:[%s2481_s9 + $0x8] sm:$0x7]  ;;  %v427_v30 = vrot.slane %v421_v28, 3 }
  0x1f   : > { %313 = vrot.lane.b32.xlu0 %v310_v4, %s2386_s11  ;;  %364 = vst [vmem:[#allocation2 + $0x10] sm:$0x70] %v362_v10  ;;  %v285_v14 = vcombine.high %v281_v13, %v281_v13  ;;  %v288_v18 = vrot.slane %v282_v16, 5  ;;  %v394_v19 = vld [vmem:[%s2481_s9 + $0x4] sm:$0x77]  ;;  %v286_v20 = vrot.slane %v281_v13, 5 }
  0x20   : > { %v398_v21 = vcombine.high %v394_v19, %v394_v19  ;;  %v441_v23 = vld [vmem:[%s2481_s9 + $0x4] sm:$0x77] }
  0x21   : > { %v287_v17 = vrot.slane %v285_v14, 5  ;;  %v420_v24 = vld [vmem:[%s2481_s9 + $0x4] sm:$0x77]  ;;  %v445_v25 = vcombine.high %v441_v23, %v441_v23  ;;  %s3271_s9 = scalar_lea.vmem [#allocation5], %s2046_s8 }
  0x22   : > { %341 = vrot.lane.b32.xlu1 %v338_v7, %s2385_s10  ;;  %v424_v26 = vcombine.high %v420_v24, %v420_v24  ;;  %v425_v31 = vrot.slane %v420_v24, 3 }
  0x23   : > { %373 = vrot.lane.b32.xlu0 %v370_v8, %s2387_s12 }
  0x24   : > { %v426_v29 = vrot.slane %v424_v26, 3 }
  0x26   : > { %339 = vrot.lane.b32.xlu1 %v334_v5, %s2385_s10 }
  0x27   : > { %311 = vrot.lane.b32.xlu0 %v302_v2, %s2386_s11 }
  0x2a   : > { %268 = vrot.lane.b32.xlu1 %v265_v12, %s2388_s13 }
  0x2b   : > { %371 = vrot.lane.b32.xlu0 %v366_v6, %s2387_s12 }
  0x2e   : > { %266 = vrot.lane.b32.xlu1 %v257_v11, %s2388_s13 }
  0x2f   : > { %270 = vrot.lane.b32.xlu0 %v258_v15, %s2388_s13 }
  0x32   : > { %293 = vrot.lane.b32.xlu1 %v288_v18, %s2389_s14 }
  0x33   : > { %291 = vrot.lane.b32.xlu0 %v287_v17, %s2389_s14 }
  0x36   : > { %401 = vrot.lane.b32.xlu1 %v398_v21, %s2390_s15 }
  0x37   : > { %289 = vrot.lane.b32.xlu0 %v286_v20, %s2389_s14 }
  0x3a   : > { %399 = vrot.lane.b32.xlu1 %v394_v19, %s2390_s15 }
  0x3b   : > { %403 = vrot.lane.b32.xlu0 %v395_v22, %s2390_s15 }
  0x3e   : > { %450 = vrot.lane.b32.xlu1 %v442_v27, %s2391_s16 }
  0x3f   : > { %448 = vrot.lane.b32.xlu0 %v445_v25, %s2391_s16 }
  0x42   : > { %432 = vrot.lane.b32.xlu1 %v427_v30, %s2392_s17 }
  0x43   : > { %430 = vrot.lane.b32.xlu0 %v426_v29, %s2392_s17 }
  0x46   : > { %428 = vrot.lane.b32.xlu1 %v425_v31, %s2392_s17 }
  0x47   : > { %446 = vrot.lane.b32.xlu0 %v441_v23, %s2391_s16 }
  0x4a   : > { %492 = vperm.xlu1 %2208, %v478_v38  }
  0x4b   : > { %487 = vperm.xlu0 %2207, %v477_v37  }
  0x4e   : > { %497 = vperm.xlu1 %2208, %v479_v45  }
  0x4f   : > { %502 = vperm.xlu0 %2207, %v480_v44  }
  0x52   : > { %507 = vperm.xlu1 %2208, %v481_v51  }
  0x53   : > { %512 = vperm.xlu0 %2207, %v482_v50  }
  0x56   : > { %740 = vrot.lane.b32.xlu1 %v735_v54, %s2391_s16 }
  0x57   : > { %742 = vrot.lane.b32.xlu0 %v739_v53, %s2391_s16 }
  0x5a   : > { %1121 = vrot.lane.b32.xlu1 %v912_v57, %s2385_s10 }
  0x5b   : > { %1123 = vrot.lane.b32.xlu0 %v916_v56, %s2385_s10 }
  0x5e   : > { %517 = vperm.xlu1 %2208, %v483_v59  }
  0x5f   : > { %522 = vperm.xlu0 %2207, %v484_v58  }
  0x62   : > { %1213 = vrot.lane.b32.xlu1 %v735_v54, %s2386_s11 }
  0x63   : > { %1215 = vrot.lane.b32.xlu0 %v739_v53, %s2386_s11 }
  0x66   : > { %917 = vrot.lane.b32.xlu1 %v912_v57, %s2390_s15 }
  0x67   : > { %919 = vrot.lane.b32.xlu0 %v916_v56, %s2390_s15 }
  0x6a   : > { %1011 = vrot.lane.b32.xlu1 %v735_v54, %s2387_s12 }
  0x6b   : > { %1013 = vrot.lane.b32.xlu0 %v739_v53, %s2387_s12 }
  0x6e   : > { %2215 = vrot.lane.b32.xlu1 %v2394_v40, %s2388_s13 }
  0x6f   : > { %2210 = vrot.lane.b32.xlu0 %v2394_v40, %s2387_s12 }
  0x72   : > { %1378 = vrot.lane.b32.xlu1 %v912_v57, %s2388_s13 }
  0x73   : > { %1380 = vrot.lane.b32.xlu0 %v916_v56, %s2388_s13 }
  0x76   : > { %2225 = vrot.lane.b32.xlu1 %v2394_v40, %s2388_s13 }
  0x77   : > { %2220 = vrot.lane.b32.xlu0 %v2394_v40, %s2387_s12 }
  0x7a   : > { %2235 = vrot.lane.b32.xlu1 %v2394_v40, %s2389_s14 }
  0x7b   : > { %2230 = vrot.lane.b32.xlu0 %v2394_v40, %s2390_s15 }
  0x7e   : > { %2245 = vrot.lane.b32.xlu1 %v2394_v40, %s2389_s14 }
  0x7f   : > { %2240 = vrot.lane.b32.xlu0 %v2394_v40, %s2390_s15 }
  0x82   : > { %2255 = vrot.lane.b32.xlu1 %v2394_v40, %s2386_s11 }
  0x83   : > { %2250 = vrot.lane.b32.xlu0 %v2394_v40, %s2392_s17 }
  0x8c   : > { %v344_v60 = vpop.permute.xlu1 %343 }
  0x8d   : > { %v316_v61 = vpop.permute.xlu0 %315 }
  0x90   : > { %v376_v62 = vpop.permute.xlu1 %375 }
  0x91   : > { %v314_v63 = vpop.permute.xlu0 %313 }
  0x92   : > { %v319_v0 = vsel %vm317_vm6, %v314_v63, %v316_v61 }
  0x93   : > { %v323_v1 = vsel %vm2551_vm3, %v319_v0, 0.0 }
  0x94   : > { %v327_v2 = vrot.slane %v323_v1, 2  ;;  %v342_v3 = vpop.permute.xlu1 %341 }
  0x95   : > { %v374_v4 = vpop.permute.xlu0 %373  ;;  %v347_v5 = vsel %vm345_vm7, %v342_v3, %v344_v60 }
  0x96   : > { %331 = vst [vmem:[#allocation2 + $0x18] ss:$-12 sps:$4 sm:$0xc1] %v327_v2   ;;  %v379_v6 = vsel %vm377_vm8, %v374_v4, %v376_v62  ;;  %v351_v7 = vsel %vm2533_vm0, %v347_v5, 0.0 }
  0x97   : > { %v383_v8 = vsel %vm2551_vm3, %v379_v6, 0.0  ;;  %v355_v9 = vrot.slane %v351_v7, 7  ;;  %v461_v7 = vld [vmem:[%s3347_s1] sm:$0xff] }
  0x98   : > { %v387_v10 = vrot.slane %v383_v8, 1  ;;  %v340_v11 = vpop.permute.xlu1 %339  ;;  %v463_v8 = vld [vmem:[%s3347_s1 + $0x10] sm:$0xff] }
  0x99   : > { %v312_v12 = vpop.permute.xlu0 %311  ;;  %359 = vst [vmem:[#allocation2 + $0x18] sm:$0xe] %v355_v9  ;;  %v346_v13 = vsel %vm345_vm7, %v340_v11, %v342_v3  ;;  %v464_v9 = vld [vmem:[%s3347_s1 + $0x18] sm:$0xff]  ;;  %v466_v11 = vld [vmem:[%s3347_s1 + $0x28] sm:$0xff] }
  0x9a   : > { %391 = vst [vmem:[#allocation2 + $0x28] ss:$-12 sps:$4 sm:$0x83] %v387_v10   ;;  %v318_v14 = vsel %vm317_vm6, %v312_v12, %v314_v63  ;;  %v350_v15 = vsel %vm2537_vm1, %v346_v13, 0.0  ;;  %v465_v10 = vld [vmem:[%s3347_s1 + $0x20] sm:$0xff]  ;;  %v467_v12 = vld [vmem:[%s3347_s1 + $0x30] sm:$0xff] }
  0x9b   : > { %v322_v16 = vsel %vm2555_vm4, %v318_v14, 0.0  ;;  %v354_v17 = vrot.slane %v350_v15, 7  ;;  %v468_v13 = vld [vmem:[%s3347_s1 + $0x38] sm:$0xff] }
  0x9c   : > { %v326_v18 = vrot.slane %v322_v16, 2  ;;  %v269_v20 = vpop.permute.xlu1 %268 }
  0x9d   : > { %v372_v19 = vpop.permute.xlu0 %371  ;;  %358 = vst [vmem:[#allocation2 + $0x10] sm:$0xe] %v354_v17 }
  0x9e   : > { %330 = vst [vmem:[#allocation2 + $0x10] ss:$-12 sps:$4 sm:$0xc1] %v326_v18   ;;  %v378_v21 = vsel %vm377_vm8, %v372_v19, %v374_v4 }
  0x9f   : > { %v382_v22 = vsel %vm2555_vm4, %v378_v21, 0.0 }
  0xa0   : > { %v386_v23 = vrot.slane %v382_v22, 1  ;;  %v267_v25 = vpop.permute.xlu1 %266 }
  0xa1   : > { %v271_v24 = vpop.permute.xlu0 %270  ;;  %v273_v27 = vsel %vm272_vm9, %v267_v25, %v269_v20  ;;  %v472_v45 = vld [vmem:[#allocation2 + $0x18] sm:$0xff] }
  0xa2   : > { %390 = vst [vmem:[#allocation2 + $0x20] ss:$-12 sps:$4 sm:$0x83] %v386_v23   ;;  %v274_v26 = vsel %vm272_vm9, %v269_v20, %v271_v24  ;;  %v277_v29 = vsel %vm2537_vm1, %v273_v27, 0.0 }
  0xa3   : > { %v278_v28 = vsel %vm2533_vm0, %v274_v26, 0.0  ;;  %279 = vst [vmem:[#allocation2] sm:$0x7] %v277_v29 }
  0xa4   : > { %280 = vst [vmem:[#allocation2 + $0x8] sm:$0x7] %v278_v28  ;;  %v294_v31 = vpop.permute.xlu1 %293 }
  0xa5   : > { %v292_v30 = vpop.permute.xlu0 %291 }
  0xa6   : > { %v297_v33 = vsel %vm295_vm10, %v292_v30, %v294_v31 }
  0xa7   : > { %301 = vst [vmem:[#allocation2 + $0x8] sm:$0x38] %v297_v33 }
  0xa8   : > { %v402_v35 = vpop.permute.xlu1 %401 }
  0xa9   : > { %v290_v34 = vpop.permute.xlu0 %289  ;;  %v471_v57 = vld [vmem:[#allocation2 + $0x10] sm:$0xff] }
  0xaa   : > { %v296_v36 = vsel %vm295_vm10, %v290_v34, %v292_v30 }
  0xab   : > { %300 = vst [vmem:[#allocation2] sm:$0x38] %v296_v36 }
  0xac   : > { %v400_v38 = vpop.permute.xlu1 %399 }
  0xad   : > { %v404_v37 = vpop.permute.xlu0 %403  ;;  %v406_v41 = vsel %vm405_vm11, %v400_v38, %v402_v35 }
  0xae   : > { %v407_v39 = vsel %vm405_vm11, %v402_v35, %v404_v37  ;;  %v470_v44 = vld [vmem:[#allocation2 + $0x8] sm:$0xff]  ;;  %v410_v47 = vsel %vm2537_vm1, %v406_v41, 0.0  ;;  %vm525_vm1 = vcmask 220160  }
  0xaf   : > { %v411_v46 = vsel %vm2533_vm0, %v407_v39, 0.0  ;;  %v2090_v50 = vpack.c.bf16 %v472_v45, %v470_v44  ;;  %v414_v52 = vrot.slane %v410_v47, 6  ;;  %vm2095_vm0 = vmpackc.low %vm550_vm14, %vm2395_vm15 }
  0xb0   : > { %v415_v51 = vrot.slane %v411_v46, 6  ;;  %v451_v54 = vpop.permute.xlu1 %450 }
  0xb1   : > { %v449_v53 = vpop.permute.xlu0 %448  ;;  %2091 = vmatprep.subr.bf16.mxu0 %v2090_v50  ;;  %418 = vst [vmem:[#allocation2 + $0x20] sm:$0x1c] %v414_v52 }
  0xb2   : > { %419 = vst [vmem:[#allocation2 + $0x28] sm:$0x1c] %v415_v51  ;;  %v454_v55 = vsel %vm452_vm12, %v449_v53, %v451_v54  ;;  %v469_v56 = vld [vmem:[#allocation2] sm:$0xff] }
  0xb3   : > { %v458_v42 = vsel %vm2551_vm3, %v454_v55, 0.0  ;;  %v2092_v58 = vpack.c.bf16 %v471_v57, %v469_v56 }
  0xb4   : > { %460 = vst [vmem:[#allocation2 + $0x38] sm:$0x7] %v458_v42  ;;  %v433_v59 = vpop.permute.xlu1 %432 }
  0xb5   : > { %v431_v43 = vpop.permute.xlu0 %430  ;;  %2093 = vmatpush1.bf16.msra.mxu0 %v2092_v58 }
  0xb6   : > { %v436_v60 = vsel %vm434_vm13, %v431_v43, %v433_v59 }
  0xb7   : > { %440 = vst [vmem:[#allocation2 + $0x28] sm:$0xe0] %v436_v60 }
  0xb8   : > { %v429_v62 = vpop.permute.xlu1 %428 }
  0xb9   : > { %v447_v61 = vpop.permute.xlu0 %446  ;;  %v435_v0 = vsel %vm434_vm13, %v429_v62, %v431_v43 }
  0xba   : > { %v453_v63 = vsel %vm452_vm12, %v447_v61, %v449_v53  ;;  %439 = vst [vmem:[#allocation2 + $0x20] sm:$0xe0] %v435_v0 }
  0xbb   : > { %v457_v1 = vsel %vm2555_vm4, %v453_v63, 0.0  ;;  %v476_v2 = vld [vmem:[#allocation2 + $0x38] sm:$0x7] }
  0xbc   : > { %459 = vst [vmem:[#allocation2 + $0x30] sm:$0x7] %v457_v1 }
  0xbe   : > { %v474_v48 = vld [vmem:[#allocation2 + $0x28] sm:$0xff] }
  0xbf   : > { %v2094_v3 = vpack.c.bf16 %v476_v2, %v474_v48 }
  0xc1   : > { %2096 = vmatprep.subr.msk.bf16.mxu0 %vm2095_vm0, %v2094_v3  ;;  %v473_v4 = vld [vmem:[#allocation2 + $0x20] sm:$0xff] }
  0xc3   : > { %v475_v5 = vld [vmem:[#allocation2 + $0x30] sm:$0x7] }
  0xc4   : > { %v2097_v6 = vpack.c.bf16 %v475_v5, %v473_v4 }
  0xc6   : > { %2099 = vmatpush1.bf16.msk.msra.mxu0 %vm2095_vm0, %v2097_v6 }
  0xc9   : > { %2051 = vmatmul.mubr.msk.f32.vlgmr.msra.gmra.mrb[0].mxu0 %vm525_vm1, %v461_v7 }
  0xca   : > { %627 = vmatprep.mubr.f32.mxu0 %v2393_v32  ;;  %v488_v14 = vpop.permute.xlu0 %487 }
  0xcd   : > { %2052 = vmatmul.mubr.msk.f32.gmra.mrb[2].mxu0 %vm525_vm1, %v462_v49 }
  0xce   : > { %633 = vmatprep.mubr.f32.mxu0 %v2393_v32  ;;  %v503_v15 = vpop.permute.xlu0 %502 }
  0xd1   : > { %2053 = vmatmul.mubr.msk.f32.gmra.mrb[4].mxu0 %vm525_vm1, %v463_v8 }
  0xd2   : > { %639 = vmatprep.mubr.f32.mxu0 %v2393_v32  ;;  %v2688_v17 = vpop.permute.xlu0 %512 }
  0xd5   : > { %2054 = vmatmul.mubr.msk.f32.gmra.mrb[6].mxu0 %vm525_vm1, %v464_v9 }
  0xd6   : > { %645 = vmatprep.mubr.f32.mxu0 %v2393_v32  ;;  %v2690_v19 = vpop.permute.xlu0 %742 }
  0xd7   : > { %vm748_vm14 = vcmp.ne.s16.totalorder %v2690_v19, 0 }
  0xd9   : > { %2055 = vmatmul.mubr.msk.f32.gmra.mrb[8].mxu0 %vm525_vm1, %v465_v10 }
  0xda   : > { %651 = vmatprep.mubr.f32.mxu0 %v2393_v32  ;;  %v2692_v21 = vpop.permute.xlu0 %1123 }
  0xdd   : > { %2056 = vmatmul.mubr.msk.f32.gmra.mrb[10].mxu0 %vm525_vm1, %v466_v11 }
  0xde   : > { %657 = vmatprep.mubr.f32.mxu0 %v2393_v32  ;;  %v2696_v23 = vpop.permute.xlu0 %522 }
  0xe1   : > { %2057 = vmatmul.mubr.msk.f32.gmra.mrb[12].mxu0 %vm525_vm1, %v467_v12 }
  0xe2   : > { %663 = vmatprep.mubr.f32.mxu0 %v2393_v32  ;;  %v493_v32 = vpop.permute.xlu1 %492  ;;  %v2700_v28 = vpop.permute.xlu0 %1215 }
  0xe5   : > { %2058 = vmatmul.mubr.msk.f32.gmra.mrb[14].mxu0 %vm525_vm1, %v468_v13 }
  0xe6   : > { %v498_v16 = vpop.permute.xlu1 %497  ;;  %v2712_v50 = vpop.permute.xlu0 %919 }
  0xe7   : > { %vm925_vm1 = vcmp.ne.s16.totalorder %v2712_v50, 0 }
  0xea   : > { %v508_v18 = vpop.permute.xlu1 %507 }
  0xee   : > { %v741_v20 = vpop.permute.xlu1 %740 }
  0xef   : > { %v2708_v46 = vsel %vm452_vm12, %v741_v20, %v2690_v19 }
  0xf0   : > { %vm747_vm2 = vcmp.ne.s16.totalorder %v2708_v46, 0 }
  0xf2   : > { %v2694_v22 = vpop.permute.xlu1 %1121 }
  0xf3   : > { %vm1126_vm3 = vcmp.ne.s16.totalorder %v2694_v22, 0  ;;  %v2752_v49 = vsel %vm345_vm7, %v2694_v22, %v2692_v21 }
  0xf4   : > { %vm1127_vm15 = vcmp.ne.s16.totalorder %v2752_v49, 0 }
  0xf6   : > { %v2698_v25 = vpop.permute.xlu1 %517 }
  0xfa   : > { %v2702_v31 = vpop.permute.xlu1 %1213 }
  0xfb   : > { %vm1218_vm5 = vcmp.ne.s16.totalorder %v2702_v31, 0  ;;  %v2764_v12 = vsel %vm317_vm6, %v2702_v31, %v2700_v28  ;;  %v2892_v31 = vpop.permute.xlu0 %1013 }
  0xfc   : > { %vm1219_vm0 = vcmp.ne.s16.totalorder %v2764_v12, 0  ;;  %v2295_v12 = vld [vmem:[%s3349_s3 + $0xc] ss:$20 sps:$4 sm:$0xff]  }
  0xfd   : > { %1820 = vmatprep.mubr.bf16.mxu1 %v2295_v12  ;;  %v1560_v12 = vld [vmem:[%s3350_s4 + $0x30] sm:$0xff] }
  0xfe   : > { %v918_v51 = vpop.permute.xlu1 %917 }
  0xff   : > { %v2720_v53 = vsel %vm405_vm11, %v918_v51, %v2712_v50 }
 0x100   : > { %vm924_vm4 = vcmp.ne.s16.totalorder %v2720_v53, 0 }
 0x102   : > { %v1012_v46 = vpop.permute.xlu1 %1011 }
 0x19c   : > { %v623_v24 = vpop.f32.mrb[0].mxu0 }
 0x19d   : > { %v625_v26 = vpop.f32.mrb[1].mxu0  ;;  %v624_v27 = vadd.f32 %v623_v24, %v488_v14 }
 0x19e   : > { %v626_v29 = vadd.f32 %v625_v26, %v488_v14 }
 0x19f   : > { %v670_v36 = vmax.f32 %v624_v27, 0.0 }
 0x1a0   : > { %v629_v30 = vpop.f32.mrb[2].mxu0  ;;  %v671_v38 = vmax.f32 %v626_v29, 0.0 }
 0x1a1   : > { %v630_v33 = vadd.f32 %v629_v30, %v493_v32  ;;  %v631_v34 = vpop.f32.mrb[3].mxu0 }
 0x1a2   : > { %v632_v35 = vadd.f32 %v631_v34, %v493_v32 }
 0x1a3   : > { %v672_v37 = vmax.f32 %v630_v33, 0.0 }
 0x1a4   : > { %v673_v39 = vmax.f32 %v632_v35, 0.0  ;;  %v635_v41 = vpop.f32.mrb[4].mxu0 }
 0x1a5   : > { %v2704_v44 = vpack.c.bf16 %v672_v37, %v670_v36  ;;  %v637_v45 = vpop.f32.mrb[5].mxu0  ;;  %v636_v52 = vadd.f32 %v635_v41, %v498_v16 }
 0x1a6   : > { %v2710_v47 = vpack.c.bf16 %v673_v39, %v671_v38  ;;  %v638_v54 = vadd.f32 %v637_v45, %v498_v16 }
 0x1a7   : > { %1317 = vrot.lane.b32.xlu0 %v2704_v44, %s2392_s17  ;;  %848 = vrot.lane.b32.xlu1 %v2704_v44, %s2389_s14  ;;  %v750_v58 = vsel %vm747_vm2, %v2704_v44, 0  ;;  %v1129_v43 = vsel %vm1126_vm3, %v2704_v44, 0  ;;  %v674_v59 = vmax.f32 %v636_v52, 0.0  ;;  %v927_v2 = vsel %vm924_vm4, %v2704_v44, 0 }
 0x1a8   : > { %v641_v55 = vpop.f32.mrb[6].mxu0  ;;  %1788 = vmatprep.subr.bf16.mxu1 %v2710_v47  ;;  %v675_v61 = vmax.f32 %v638_v54, 0.0  ;;  %v1221_v9 = vsel %vm1218_vm5, %v2704_v44, 0  ;;  %v1130_v20 = vsel %vm1127_vm15, %v2710_v47, 0  ;;  %v928_v30 = vsel %vm925_vm1, %v2710_v47, 0 }
 0x1a9   : > { %v642_v56 = vadd.f32 %v641_v55, %v503_v15  ;;  %v643_v57 = vpop.f32.mrb[7].mxu0  ;;  %1789 = vmatpush1.bf16.msra.mxu1 %v2704_v44  ;;  %v1222_v33 = vsel %vm1219_vm0, %v2710_v47, 0 }
 0x1aa   : > { %v644_v42 = vadd.f32 %v643_v57, %v503_v15 }
 0x1ab   : > { %v676_v60 = vmax.f32 %v642_v56, 0.0  ;;  %775 = vrot.lane.b32.xlu1 %v750_v58, %s2388_s13  ;;  %1153 = vrot.lane.b32.xlu0 %v1129_v43, %s2387_s12 }
 0x1ac   : > { %v677_v62 = vmax.f32 %v644_v42, 0.0  ;;  %v647_v63 = vpop.f32.mrb[8].mxu0 }
 0x1ad   : > { %v2735_v0 = vpack.c.bf16 %v676_v60, %v674_v59  ;;  %v649_v1 = vpop.f32.mrb[9].mxu0  ;;  %v648_v3 = vadd.f32 %v647_v63, %v508_v18 }
 0x1ae   : > { %v2737_v48 = vpack.c.bf16 %v677_v62, %v675_v61  ;;  %v650_v4 = vadd.f32 %v649_v1, %v508_v18  ;;  %v751_v18 = vsel %vm748_vm14, %v2710_v47, 0 }
 0x1af   : > { %850 = vrot.lane.b32.xlu0 %v2710_v47, %s2389_s14  ;;  %952 = vrot.lane.b32.xlu1 %v927_v2, %s2386_s11  ;;  %v678_v10 = vmax.f32 %v648_v3, 0.0  ;;  %v753_v39 = vsel %vm747_vm2, %v2735_v0, 0  ;;  %v1224_v41 = vsel %vm1218_vm5, %v2735_v0, 0  ;;  %v930_v45 = vsel %vm924_vm4, %v2735_v0, 0  ;;  %v2903_v2 = vpop.permute.xlu0 %2210  ;;  %v2905_v3 = vpop.permute.xlu1 %2215 }
 0x1b0   : > { %v653_v5 = vpop.f32.mrb[10].mxu0  ;;  %1790 = vmatprep.subr.bf16.mxu1 %v2737_v48  ;;  %v679_v13 = vmax.f32 %v650_v4, 0.0  ;;  %v754_v51 = vsel %vm748_vm14, %v2737_v48, 0  ;;  %v931_v52 = vsel %vm925_vm1, %v2737_v48, 0  ;;  %v1133_v54 = vsel %vm1127_vm15, %v2737_v48, 0 }
 0x1b1   : > { %v654_v6 = vadd.f32 %v653_v5, %v2688_v17  ;;  %v655_v7 = vpop.f32.mrb[11].mxu0  ;;  %1791 = vmatpush1.bf16.msra.mxu1 %v2735_v0  ;;  %v1225_v56 = vsel %vm1219_vm0, %v2737_v48, 0 }
 0x1b2   : > { %v656_v8 = vadd.f32 %v655_v7, %v2688_v17 }
 0x1b3   : > { %v680_v11 = vmax.f32 %v654_v6, 0.0  ;;  %1245 = vrot.lane.b32.xlu0 %v1221_v9, %s2390_s15  ;;  %1319 = vrot.lane.b32.xlu1 %v2710_v47, %s2392_s17  ;;  %v1381_v4 = vpop.permute.xlu0 %1380  ;;  %v2914_v5 = vpop.permute.xlu1 %1378  ;;  %v1016_v9 = vsel %vm377_vm8, %v1012_v46, %v2892_v31 }
 0x1b4   : > { %v681_v14 = vmax.f32 %v656_v8, 0.0  ;;  %v659_v32 = vpop.f32.mrb[12].mxu0 }
 0x1b5   : > { %v2768_v15 = vpack.c.bf16 %v680_v11, %v678_v10  ;;  %v661_v16 = vpop.f32.mrb[13].mxu0  ;;  %v660_v21 = vadd.f32 %v659_v32, %v2698_v25 }
 0x1b6   : > { %v2770_v17 = vpack.c.bf16 %v681_v14, %v679_v13  ;;  %v662_v24 = vadd.f32 %v661_v16, %v2698_v25 }
 0x1b7   : > { %777 = vrot.lane.b32.xlu0 %v751_v18, %s2388_s13  ;;  %1155 = vrot.lane.b32.xlu1 %v1130_v20, %s2387_s12  ;;  %v682_v34 = vmax.f32 %v660_v21, 0.0  ;;  %v1135_v55 = vsel %vm1126_vm3, %v2768_v15, 0  ;;  %v1227_v57 = vsel %vm1218_vm5, %v2768_v15, 0  ;;  %v756_v42 = vsel %vm747_vm2, %v2768_v15, 0  ;;  %v2922_v7 = vpop.permute.xlu0 %2220  ;;  %v2924_v49 = vpop.permute.xlu1 %2225 }
 0x1b8   : > { %v665_v26 = vpop.f32.mrb[14].mxu0  ;;  %1792 = vmatprep.subr.bf16.mxu1 %v2770_v17  ;;  %v683_v35 = vmax.f32 %v662_v24, 0.0  ;;  %v757_v58 = vsel %vm748_vm14, %v2770_v17, 0  ;;  %v1136_v43 = vsel %vm1127_vm15, %v2770_v17, 0  ;;  %v1228_v60 = vsel %vm1219_vm0, %v2770_v17, 0 }
 0x1b9   : > { %v666_v27 = vadd.f32 %v665_v26, %v2696_v23  ;;  %v667_v28 = vpop.f32.mrb[15].mxu0  ;;  %1793 = vmatpush1.bf16.msra.mxu1 %v2768_v15  ;;  %v933_v1 = vsel %vm924_vm4, %v2768_v15, 0  ;;  %v934_v19 = vsel %vm925_vm1, %v2770_v17, 0 }
 0x1ba   : > { %v668_v29 = vadd.f32 %v667_v28, %v2696_v23  ;;  %v1132_v23 = vsel %vm1126_vm3, %v2735_v0, 0  ;;  %v1382_v28 = vsel %vm272_vm9, %v2914_v5, %v1381_v4  ;;  %v1555_v4 = vld [vmem:[%s3350_s4 + $0x8] sm:$0xff] }
 0x1bb   : > { %v684_v25 = vmax.f32 %v666_v27, 0.0  ;;  %954 = vrot.lane.b32.xlu0 %v928_v30, %s2386_s11  ;;  %1247 = vrot.lane.b32.xlu1 %v1222_v33, %s2390_s15  ;;  %v2941_v53 = vpop.permute.xlu0 %2230  ;;  %v2943_v11 = vpop.permute.xlu1 %2235  ;;  %v2301_v27 = vld [vmem:[%s3349_s3 + $0x4] ss:$20 sps:$4 sm:$0xff]  }
 0x1bc   : > { %v685_v36 = vmax.f32 %v668_v29, 0.0  ;;  %v2237_v29 = vunpack.i.l.bf16 %v2943_v11  ;;  %1747 = vmatprep.mubr.bf16.mxu0 %v2301_v27 }
 0x1bd   : > { %v2796_v37 = vpack.c.bf16 %v684_v25, %v682_v34 }
 0x1be   : > { %v2798_v38 = vpack.c.bf16 %v685_v36, %v683_v35 }
 0x1bf   : > { %1159 = vrot.lane.b32.xlu0 %v1132_v23, %s2387_s12  ;;  %854 = vrot.lane.b32.xlu1 %v2735_v0, %s2389_s14  ;;  %v1138_v59 = vsel %vm1126_vm3, %v2796_v37, 0  ;;  %v1230_v61 = vsel %vm1218_vm5, %v2796_v37, 0  ;;  %v759_v22 = vsel %vm747_vm2, %v2796_v37, 0  ;;  %v936_v8 = vsel %vm924_vm4, %v2796_v37, 0  ;;  %v2954_v32 = vpop.permute.xlu0 %2240  ;;  %v2956_v16 = vpop.permute.xlu1 %2245 }
 0x1c0   : > { %1794 = vmatprep.subr.bf16.mxu1 %v2798_v38  ;;  %v760_v62 = vsel %vm748_vm14, %v2798_v38, 0  ;;  %v1139_v63 = vsel %vm1127_vm15, %v2798_v38, 0  ;;  %v1231_v6 = vsel %vm1219_vm0, %v2798_v38, 0  ;;  %vm1019_vm2 = vcmp.ne.s16.totalorder %v2892_v31, 0  ;;  %v1554_v31 = vld [vmem:[%s3350_s4] sm:$0xff] }
 0x1c1   : > { %1795 = vmatpush1.bf16.msra.mxu1 %v2796_v37  ;;  %v1022_v10 = vsel %vm1019_vm2, %v2710_v47, 0  ;;  %vm1018_vm3 = vcmp.ne.s16.totalorder %v1016_v9, 0  ;;  %v937_v18 = vsel %vm925_vm1, %v2798_v38, 0  ;;  %v1025_v21 = vsel %vm1019_vm2, %v2737_v48, 0 }
 0x1c2   : > { %v1024_v13 = vsel %vm1018_vm3, %v2735_v0, 0  ;;  %v1021_v14 = vsel %vm1018_vm3, %v2704_v44, 0  ;;  %v1027_v20 = vsel %vm1018_vm3, %v2768_v15, 0  ;;  %v1028_v26 = vsel %vm1019_vm2, %v2770_v17, 0 }
 0x1c3   : > { %856 = vrot.lane.b32.xlu0 %v2737_v48, %s2389_s14  ;;  %781 = vrot.lane.b32.xlu1 %v753_v39, %s2388_s13  ;;  %v2971_v24 = vpop.permute.xlu0 %2250  ;;  %v2973_v50 = vpop.permute.xlu1 %2255  ;;  %v1030_v25 = vsel %vm1018_vm3, %v2796_v37, 0  ;;  %vm1384_vm4 = vcmp.ne.s16.totalorder %v1382_v28, 0  ;;  %v1031_v23 = vsel %vm1019_vm2, %v2798_v38, 0  ;;  %vm1383_vm5 = vcmp.ne.s16.totalorder %v2914_v5, 0  ;;  %v1557_v5 = vld [vmem:[%s3350_s4 + $0x18] sm:$0xff] }
 0x1c4   : > { %v1387_v39 = vsel %vm1384_vm4, %v2710_v47, 0  ;;  %v1561_v28 = vld [vmem:[%s3350_s4 + $0x38] sm:$0xff] }
 0x1c7   : > { %1251 = vrot.lane.b32.xlu0 %v1224_v41, %s2390_s15  ;;  %958 = vrot.lane.b32.xlu1 %v930_v45, %s2386_s11 }
 0x1cb   : > { %783 = vrot.lane.b32.xlu0 %v754_v51, %s2388_s13  ;;  %1325 = vrot.lane.b32.xlu1 %v2737_v48, %s2392_s17  ;;  %v1390_v51 = vsel %vm1384_vm4, %v2737_v48, 0  ;;  %v1389_v48 = vsel %vm1383_vm5, %v2735_v0, 0 }
 0x1cf   : > { %960 = vrot.lane.b32.xlu0 %v931_v52, %s2386_s11  ;;  %1161 = vrot.lane.b32.xlu1 %v1133_v54, %s2387_s12  ;;  %v1386_v52 = vsel %vm1383_vm5, %v2704_v44, 0 }
 0x1d3   : > { %1165 = vrot.lane.b32.xlu0 %v1135_v55, %s2387_s12  ;;  %1253 = vrot.lane.b32.xlu1 %v1225_v56, %s2390_s15  ;;  %v1393_v56 = vsel %vm1384_vm4, %v2770_v17, 0 }
 0x1d7   : > { %862 = vrot.lane.b32.xlu0 %v2770_v17, %s2389_s14  ;;  %860 = vrot.lane.b32.xlu1 %v2768_v15, %s2389_s14 }
 0x1db   : > { %1257 = vrot.lane.b32.xlu0 %v1227_v57, %s2390_s15  ;;  %787 = vrot.lane.b32.xlu1 %v756_v42, %s2388_s13  ;;  %v2212_v57 = vunpack.i.l.bf16 %v2903_v2  ;;  %v2217_v42 = vunpack.i.l.bf16 %v2905_v3 }
 0x1df   : > { %789 = vrot.lane.b32.xlu0 %v757_v58, %s2388_s13  ;;  %1167 = vrot.lane.b32.xlu1 %v1136_v43, %s2387_s12 }
 0x1e3   : > { %1171 = vrot.lane.b32.xlu0 %v1138_v59, %s2387_s12  ;;  %1259 = vrot.lane.b32.xlu1 %v1228_v60, %s2390_s15 }
 0x1e7   : > { %868 = vrot.lane.b32.xlu0 %v2798_v38, %s2389_s14  ;;  %866 = vrot.lane.b32.xlu1 %v2796_v37, %s2389_s14 }
 0x1eb   : > { %1263 = vrot.lane.b32.xlu0 %v1230_v61, %s2390_s15  ;;  %793 = vrot.lane.b32.xlu1 %v759_v22, %s2388_s13 }
 0x1ef   : > { %795 = vrot.lane.b32.xlu0 %v760_v62, %s2388_s13  ;;  %1173 = vrot.lane.b32.xlu1 %v1139_v63, %s2387_s12  ;;  %s1980_s12 = sshll.u32 %s3271_s9, 4  ;;  %s3298_s12 = int_to_ptr.vmem [resolvable:$true] %s1980_s12 }
 0x1f3   : > { %1323 = vrot.lane.b32.xlu0 %v2735_v0, %s2392_s17  ;;  %964 = vrot.lane.b32.xlu1 %v933_v1, %s2386_s11 }
 0x1f7   : > { %966 = vrot.lane.b32.xlu0 %v934_v19, %s2386_s11  ;;  %1331 = vrot.lane.b32.xlu1 %v2770_v17, %s2392_s17  ;;  %v1392_v17 = vsel %vm1383_vm5, %v2768_v15, 0  ;;  %v1556_v19 = vld [vmem:[%s3350_s4 + $0x10] sm:$0xff] }
 0x1fb   : > { %2260 = vrot.lane.b32.xlu0 %v2394_v40, %s2392_s17  ;;  %2265 = vrot.lane.b32.xlu1 %v2394_v40, %s2386_s11 }
 0x1ff   : > { %1329 = vrot.lane.b32.xlu0 %v2768_v15, %s2392_s17  ;;  %1265 = vrot.lane.b32.xlu1 %v1231_v6, %s2390_s15  ;;  %v1396_v15 = vsel %vm1384_vm4, %v2798_v38, 0  ;;  %s3304_s15 = scalar_lea.sflag [#allocation6], %s215_s7 }
 0x203   : > { %1335 = vrot.lane.b32.xlu0 %v2796_v37, %s2392_s17  ;;  %970 = vrot.lane.b32.xlu1 %v936_v8, %s2386_s11 }
 0x207   : > { %1048 = vrot.lane.b32.xlu0 %v1022_v10, %s2385_s10  ;;  %1337 = vrot.lane.b32.xlu1 %v2798_v38, %s2392_s17  ;;  %v1395_v38 = vsel %vm1383_vm5, %v2796_v37, 0  ;;  %v1558_v37 = vld [vmem:[%s3350_s4 + $0x20] sm:$0xff]  ;;  %s2396_s17 = smov [#allocation5]  }
 0x208   : > { %s2325_s23 = sshll.u32 %s2396_s17, 4  ;;  %s2326_s23 = int_to_ptr.vmem [resolvable:$false] %s2325_s23 }
 0x209   : > { %s2327_s25 = scalar_lea.vmem %s2326_s23, 4096  ;;  %p2328_p0 = scmp.lt.s32.totalorder %s3298_s12, %s2326_s23 }
 0x20b   : > { %1052 = vrot.lane.b32.xlu0 %v1024_v13, %s2385_s10  ;;  %1046 = vrot.lane.b32.xlu1 %v1021_v14, %s2385_s10  ;;  %v1559_v13 = vld [vmem:[%s3350_s4 + $0x28] sm:$0xff] }
 0x20f   : > { %972 = vrot.lane.b32.xlu0 %v937_v18, %s2386_s11  ;;  %2270 = vrot.lane.b32.xlu1 %v2394_v40, %s2385_s10 }
 0x213   : > { %1058 = vrot.lane.b32.xlu0 %v1027_v20, %s2385_s10  ;;  %1054 = vrot.lane.b32.xlu1 %v1025_v21, %s2385_s10  ;;  %v2218_v20 = vunpack.i.h.bf16 %v2905_v3 }
 0x217   : > { %2275 = vrot.lane.b32.xlu0 %v2394_v40, %s2385_s10  ;;  %1060 = vrot.lane.b32.xlu1 %v1028_v26, %s2385_s10  ;;  %v2213_v26 = vunpack.i.h.bf16 %v2903_v2 }
 0x219   : > { %v1318_v30 = vpop.permute.xlu0 %1317  ;;  %v849_v33 = vpop.permute.xlu1 %848 }
 0x21a   : > { %v2988_v34 = vsel %vm295_vm10, %v2237_v29, %v849_v33 }
 0x21b   : > { %2280 = vrot.lane.b32.xlu0 %v2394_v40, %s2391_s16  ;;  %1064 = vrot.lane.b32.xlu1 %v1030_v25, %s2385_s10 }
 0x21d   : > { %v1154_v35 = vpop.permute.xlu0 %1153  ;;  %v776_v36 = vpop.permute.xlu1 %775 }
 0x21e   : > { %v798_v61 = vsel %vm272_vm9, %v2217_v42, %v776_v36 }
 0x21f   : > { %1066 = vrot.lane.b32.xlu0 %v1031_v23, %s2385_s10  ;;  %1412 = vrot.lane.b32.xlu1 %v1387_v39, %s2391_s16  ;;  %s2321_s10 = scalar_lea.vmem %s3298_s12, 2048 }
 0x220   : > { %p2322_p11 = scmp.ne.s32.totalorder %s3298_s12, %s2321_s10  ;;  %p2329_p1 = scmp.lt.s32.totalorder %s2327_s25, %s2321_s10 }
 0x221   : > { %v851_v41 = vpop.permute.xlu0 %850  ;;  %v3003_v45 = vpop.permute.xlu1 %952 }
 0x222   : > { %v3011_v54 = vsel %vm295_vm10, %v849_v33, %v851_v41  ;;  %v2222_v41 = vunpack.i.l.bf16 %v2922_v7  ;;  %p2323_p12 = pnand %p2322_p11, %p2466_p5  ;;  %p2330_p2 = por %p2329_p1, %p2328_p0 }
 0x223   : > { %1418 = vrot.lane.b32.xlu0 %v1390_v51, %s2391_s16  ;;  %1410 = vrot.lane.b32.xlu1 %v1386_v52, %s2391_s16  ;;  %v2227_v51 = vunpack.i.l.bf16 %v2924_v49 }
 0x224   : > { %p2324_p13 = pneg %p2323_p12 }
 0x225   : > { %v3015_v47 = vpop.permute.xlu0 %1245  ;;  %v3017_v55 = vpop.permute.xlu1 %1319 }
 0x226   : > { %v3026_v44 = vsel %vm434_vm13, %v1318_v30, %v3017_v55  ;;  %p2331_p3 = pnand %p2330_p2, %p2324_p13 }
 0x227   : > { %1424 = vrot.lane.b32.xlu0 %v1393_v56, %s2391_s16  ;;  %1416 = vrot.lane.b32.xlu1 %v1389_v48, %s2391_s16 }
 0x229   : > { %v778_v58 = vpop.permute.xlu0 %777  ;;  %v1156_v43 = vpop.permute.xlu1 %1155 }
 0x22a   : > { %v799_v0 = vsel %vm272_vm9, %v776_v36, %v778_v58  ;;  %v1178_v59 = vsel %vm377_vm8, %v1156_v43, %v2212_v57  ;;  %v1177_v60 = vsel %vm377_vm8, %v1154_v35, %v1156_v43 }
 0x22b   : > { %1422 = vrot.lane.b32.xlu0 %v1392_v17, %s2391_s16  ;;  %1426 = vrot.lane.b32.xlu1 %v2394_v40, %s2391_s16 }
 0x22c   : > { %1715 = vmatprep.subr.bf16.mxu0 %v799_v0  ;;  %1796 = vmatprep.subr.bf16.mxu1 %v1178_v59 }
 0x22d   : > { %1716 = vmatpush1.bf16.msra.mxu0 %v798_v61  ;;  %1797 = vmatpush1.bf16.msra.mxu1 %v1177_v60  ;;  %v955_v22 = vpop.permute.xlu0 %954  ;;  %v3042_v62 = vpop.permute.xlu1 %1247 }
 0x22e   : > { %v3048_v63 = vsel %vm317_vm6, %v3003_v45, %v955_v22  ;;  %v2223_v22 = vunpack.i.h.bf16 %v2922_v7 }
 0x22f   : > { %1432 = vrot.lane.b32.xlu0 %v2394_v40, %s2391_s16  ;;  %1430 = vrot.lane.b32.xlu1 %v1396_v15, %s2391_s16  ;;  %v2228_v15 = vunpack.i.h.bf16 %v2924_v49 }
 0x231   : > { %v1160_v46 = vpop.permute.xlu0 %1159  ;;  %v3056_v1 = vpop.permute.xlu1 %854 }
 0x233   : > { %1564 = vperm.xlu0 %2207, %v1554_v31   ;;  %1428 = vrot.lane.b32.xlu1 %v1395_v38, %s2391_s16  ;;  %v2232_v38 = vunpack.i.l.bf16 %v2941_v53  ;;  %s2089_s16 = sshll.u32 %s2449_s22, 11 }
 0x234   : > { %s3295_s22 = scalar_lea.hbm %s3351_s5, %s2089_s16 }
 0x235   : > { %v3068_v6 = vpop.permute.xlu0 %856  ;;  %v782_v8 = vpop.permute.xlu1 %781  ;;  %v1270_v7 = vsel %vm405_vm11, %v3042_v62, %v2232_v38 }
 0x236   : > { %v800_v27 = vsel %vm272_vm9, %v2218_v20, %v782_v8  ;;  %v874_v20 = vsel %vm295_vm10, %v3056_v1, %v3068_v6  ;;  %v2247_v6 = vunpack.i.l.bf16 %v2956_v16 }
 0x237   : > { %1574 = vperm.xlu0 %2207, %v1556_v19   ;;  %1569 = vperm.xlu1 %2208, %v1555_v4  }
 0x239   : > { %v3076_v9 = vpop.permute.xlu0 %1251  ;;  %v3078_v10 = vpop.permute.xlu1 %958 }
 0x23b   : > { %1584 = vperm.xlu0 %2207, %v1558_v37   ;;  %1579 = vperm.xlu1 %2208, %v1557_v5  }
 0x23d   : > { %v784_v14 = vpop.permute.xlu0 %783  ;;  %v3086_v18 = vpop.permute.xlu1 %1325 }
 0x23e   : > { %v801_v21 = vsel %vm272_vm9, %v782_v8, %v784_v14 }
 0x23f   : > { %1594 = vperm.xlu0 %2207, %v1560_v12   ;;  %1589 = vperm.xlu1 %2208, %v1559_v13   ;;  %v2233_v12 = vunpack.i.h.bf16 %v2941_v53  ;;  %v1269_v13 = vsel %vm405_vm11, %v3015_v47, %v3042_v62  ;;  %v2242_v53 = vunpack.i.l.bf16 %v2954_v32 }
 0x240   : > { %1717 = vmatprep.subr.bf16.mxu0 %v801_v21  ;;  %v2238_v21 = vunpack.i.h.bf16 %v2943_v11 }
 0x241   : > { %1718 = vmatpush1.bf16.msra.mxu0 %v800_v27  ;;  %v3095_v29 = vpop.permute.xlu0 %960  ;;  %v1162_v30 = vpop.permute.xlu1 %1161 }
 0x242   : > { %v1180_v33 = vsel %vm377_vm8, %v1162_v30, %v2213_v26  ;;  %v1179_v3 = vsel %vm377_vm8, %v1160_v46, %v1162_v30  ;;  %v873_v47 = vsel %vm295_vm10, %v2238_v21, %v3056_v1 }
 0x243   : > { %1599 = vperm.xlu1 %2208, %v1561_v28   ;;  %1798 = vmatprep.subr.bf16.mxu1 %v1180_v33 }
 0x244   : > { %1799 = vmatpush1.bf16.msra.mxu1 %v1179_v3  ;;  %v2248_v3 = vunpack.i.h.bf16 %v2956_v16 }
 0x245   : > { %v1166_v25 = vpop.permute.xlu0 %1165  ;;  %v1254_v2 = vpop.permute.xlu1 %1253 }
 0x246   : > { %v1272_v14 = vsel %vm405_vm11, %v1254_v2, %v2233_v12 }
 0x249   : > { %v863_v35 = vpop.permute.xlu0 %862  ;;  %v3099_v36 = vpop.permute.xlu1 %860 }
 0x24a   : > { %v876_v11 = vsel %vm295_vm10, %v3099_v36, %v863_v35  ;;  %v875_v30 = vsel %vm295_vm10, %v2247_v6, %v3099_v36  ;;  %v2252_v35 = vunpack.i.l.bf16 %v2971_v24 }
 0x24d   : > { %v3101_v23 = vpop.permute.xlu0 %1257  ;;  %v788_v39 = vpop.permute.xlu1 %787 }
 0x24e   : > { %v802_v58 = vsel %vm272_vm9, %v2227_v51, %v788_v39 }
 0x251   : > { %v790_v52 = vpop.permute.xlu0 %789  ;;  %v1168_v56 = vpop.permute.xlu1 %1167 }
 0x252   : > { %v803_v48 = vsel %vm272_vm9, %v788_v39, %v790_v52  ;;  %v1182_v57 = vsel %vm377_vm8, %v1168_v56, %v2222_v41  ;;  %v1181_v42 = vsel %vm377_vm8, %v1166_v25, %v1168_v56  ;;  %v2253_v52 = vunpack.i.h.bf16 %v2971_v24 }
 0x253   : > { %1719 = vmatprep.subr.bf16.mxu0 %v803_v48  ;;  %1800 = vmatprep.subr.bf16.mxu1 %v1182_v57 }
 0x254   : > { %1720 = vmatpush1.bf16.msra.mxu0 %v802_v58  ;;  %1801 = vmatpush1.bf16.msra.mxu1 %v1181_v42  ;;  %v1345_v57 = vsel %vm434_vm13, %v3086_v18, %v2253_v52  ;;  %v2258_v42 = vunpack.i.h.bf16 %v2973_v50  ;;  %v2307_v52 = vld [vmem:[%s3349_s3 + $0x28] ss:$20 sps:$4 sm:$0xff]  }
 0x255   : > { %v1172_v43 = vpop.permute.xlu0 %1171  ;;  %v1260_v17 = vpop.permute.xlu1 %1259 }
 0x256   : > { %v1274_v62 = vsel %vm405_vm11, %v1260_v17, %v2242_v53  ;;  %v1273_v1 = vsel %vm405_vm11, %v3101_v23, %v1260_v17  ;;  %v2257_v23 = vunpack.i.l.bf16 %v2973_v50  ;;  %v977_v24 = vsel %vm317_vm6, %v2258_v42, %v3078_v10  ;;  %v2302_v53 = vld [vmem:[%s3349_s3 + $0x5c] ss:$20 sps:$4 sm:$0xff]  }
 0x258   : > { %v975_v56 = vsel %vm317_vm6, %v2257_v23, %v3003_v45 }
 0x259   : > { %v869_v0 = vpop.permute.xlu0 %868  ;;  %v867_v59 = vpop.permute.xlu1 %866 }
 0x25a   : > { %v878_v33 = vsel %vm295_vm10, %v867_v59, %v869_v0  ;;  %v877_v41 = vsel %vm295_vm10, %v2248_v3, %v867_v59 }
 0x25d   : > { %v1264_v60 = vpop.permute.xlu0 %1263  ;;  %v794_v61 = vpop.permute.xlu1 %793 }
 0x25e   : > { %v804_v37 = vsel %vm272_vm9, %v2228_v15, %v794_v61 }
 0x261   : > { %v796_v31 = vpop.permute.xlu0 %795  ;;  %v1174_v46 = vpop.permute.xlu1 %1173 }
 0x262   : > { %v805_v19 = vsel %vm272_vm9, %v794_v61, %v796_v31  ;;  %v1184_v4 = vsel %vm377_vm8, %v1174_v46, %v2223_v22  ;;  %v1183_v8 = vsel %vm377_vm8, %v1172_v43, %v1174_v46 }
 0x263   : > { %1721 = vmatprep.subr.bf16.mxu0 %v805_v19  ;;  %1802 = vmatprep.subr.bf16.mxu1 %v1184_v4  ;;  %v2293_v19 = vld [vmem:[%s3349_s3 + $0x8] ss:$20 sps:$4 sm:$0xff]  }
 0x264   : > { %1722 = vmatpush1.bf16.msra.mxu0 %v804_v37  ;;  %1803 = vmatpush1.bf16.msra.mxu1 %v1183_v8  ;;  %v2296_v8 = vld [vmem:[%s3349_s3 + $0x34] ss:$20 sps:$4 sm:$0xff]  }
 0x265   : > { %v3118_v49 = vpop.permute.xlu0 %1323  ;;  %1804 = vmatprep.subr.bf16.mxu1 %v1270_v7  ;;  %v3120_v5 = vpop.permute.xlu1 %964  ;;  %1723 = vmatprep.subr.bf16.mxu0 %v3011_v54 }
 0x268   : > { %1724 = vmatpush1.bf16.msra.mxu0 %v2988_v34  ;;  %1805 = vmatpush1.bf16.msra.mxu1 %v1269_v13  ;;  %v1271_v34 = vsel %vm405_vm11, %v3076_v9, %v1254_v2  ;;  %v2243_v9 = vunpack.i.h.bf16 %v2954_v32  ;;  %v1343_v32 = vsel %vm434_vm13, %v3017_v55, %v2252_v35  ;;  %v978_v55 = vsel %vm317_vm6, %v3078_v10, %v3095_v29  ;;  %v2304_v35 = vld [vmem:[%s3349_s3 + $0x58] ss:$20 sps:$4 sm:$0xff]  }
 0x269   : > { %v967_v26 = vpop.permute.xlu0 %966  ;;  %1806 = vmatprep.subr.bf16.mxu1 %v1272_v14  ;;  %v3133_v54 = vpop.permute.xlu1 %1331  ;;  %1725 = vmatprep.subr.bf16.mxu0 %v874_v20 }
 0x26a   : > { %v980_v50 = vsel %vm317_vm6, %v3120_v5, %v967_v26  ;;  %v2298_v26 = vld [vmem:[%s3349_s3 + $0x30] ss:$20 sps:$4 sm:$0xff]  }
 0x26c   : > { %1726 = vmatpush1.bf16.msra.mxu0 %v873_v47  ;;  %1807 = vmatpush1.bf16.msra.mxu1 %v1271_v34 }
 0x26d   : > { %v2261_v27 = vpop.permute.xlu0 %2260  ;;  %1808 = vmatprep.subr.bf16.mxu1 %v1274_v62  ;;  %v2266_v28 = vpop.permute.xlu1 %2265  ;;  %1727 = vmatprep.subr.bf16.mxu0 %v876_v11 }
 0x26e   : > { %v2262_v48 = vunpack.i.l.bf16 %v2261_v27  ;;  %v2267_v45 = vunpack.i.l.bf16 %v2266_v28  ;;  %v2263_v0 = vunpack.i.h.bf16 %v2261_v27 }
 0x270   : > { %1728 = vmatpush1.bf16.msra.mxu0 %v875_v30  ;;  %1809 = vmatpush1.bf16.msra.mxu1 %v1273_v1  ;;  %v1347_v43 = vsel %vm434_vm13, %v3133_v54, %v2262_v48  ;;  %v979_v10 = vsel %vm317_vm6, %v2267_v45, %v3120_v5 }
 0x271   : > { %v1330_v25 = vpop.permute.xlu0 %1329  ;;  %v1266_v2 = vpop.permute.xlu1 %1265  ;;  %1729 = vmatprep.subr.bf16.mxu0 %v878_v33  ;;  %v2299_v33 = vld [vmem:[%s3349_s3] ss:$20 sps:$4 sm:$0xff]  }
 0x272   : > { %v1276_v39 = vsel %vm405_vm11, %v1266_v2, %v2243_v9  ;;  %v1275_v36 = vsel %vm405_vm11, %v1264_v60, %v1266_v2  ;;  %v1346_v59 = vsel %vm434_vm13, %v1330_v25, %v3133_v54  ;;  %v2268_v60 = vunpack.i.h.bf16 %v2266_v28 }
 0x273   : > { %1810 = vmatprep.subr.bf16.mxu1 %v1276_v39 }
 0x274   : > { %1730 = vmatpush1.bf16.msra.mxu0 %v877_v41  ;;  %1811 = vmatpush1.bf16.msra.mxu1 %v1275_v36  ;;  %v2305_v41 = vld [vmem:[%s3349_s3 + $0x2c] ss:$20 sps:$4 sm:$0xff]  }
 0x275   : > { %v1336_v16 = vpop.permute.xlu0 %1335  ;;  %1812 = vmatprep.subr.bf16.mxu1 %v1343_v32  ;;  %v971_v51 = vpop.permute.xlu1 %970  ;;  %1731 = vmatprep.subr.bf16.mxu0 %v3048_v63  ;;  %v2308_v32 = vld [vmem:[%s3349_s3 + $0x84] ss:$20 sps:$4 sm:$0xff]  }
 0x276   : > { %v981_v31 = vsel %vm317_vm6, %v2268_v60, %v971_v51 }
 0x278   : > { %1732 = vmatpush1.bf16.msra.mxu0 %v975_v56  ;;  %1813 = vmatpush1.bf16.msra.mxu1 %v3026_v44  ;;  %v1344_v44 = vsel %vm434_vm13, %v3118_v49, %v3086_v18 }
 0x279   : > { %v1049_v58 = vpop.permute.xlu0 %1048  ;;  %1814 = vmatprep.subr.bf16.mxu1 %v1345_v57  ;;  %v1338_v63 = vpop.permute.xlu1 %1337  ;;  %1733 = vmatprep.subr.bf16.mxu0 %v978_v55  ;;  %v2311_v57 = vld [vmem:[%s3349_s3 + $0x54] ss:$20 sps:$4 sm:$0xff]  }
 0x27a   : > { %v1349_v18 = vsel %vm434_vm13, %v1338_v63, %v2263_v0  ;;  %v1348_v38 = vsel %vm434_vm13, %v1336_v16, %v1338_v63  ;;  %v2317_v0 = vld [vmem:[%s3349_s3 + $0x78] ss:$20 sps:$4 sm:$0xff]  }
 0x27c   : > { %1734 = vmatpush1.bf16.msra.mxu0 %v977_v24  ;;  %1815 = vmatpush1.bf16.msra.mxu1 %v1344_v44  ;;  %v2313_v44 = vld [vmem:[%s3349_s3 + $0x50] ss:$20 sps:$4 sm:$0xff]  }
 0x27d   : > { %v1053_v29 = vpop.permute.xlu0 %1052  ;;  %1816 = vmatprep.subr.bf16.mxu1 %v1347_v43  ;;  %v1047_v17 = vpop.permute.xlu1 %1046  ;;  %1735 = vmatprep.subr.bf16.mxu0 %v980_v50  ;;  %v2315_v43 = vld [vmem:[%s3349_s3 + $0x7c] ss:$20 sps:$4 sm:$0xff]  }
 0x27e   : > { %v1070_v4 = vsel %vm345_vm7, %v1047_v17, %v1049_v58  ;;  %v2310_v58 = vld [vmem:[%s3349_s3 + $0x80] ss:$20 sps:$4 sm:$0xff]  }
 0x280   : > { %1736 = vmatpush1.bf16.msra.mxu0 %v979_v10  ;;  %1817 = vmatpush1.bf16.msra.mxu1 %v1346_v59  ;;  %v2318_v10 = vld [vmem:[%s3349_s3 + $0x60] ss:$20 sps:$4 sm:$0xff]   ;;  %v2319_v59 = vld [vmem:[%s3349_s3 + $0x10] ss:$20 sps:$4 sm:$0xff]  }
 0x281   : > { %v973_v61 = vpop.permute.xlu0 %972  ;;  %1818 = vmatprep.subr.bf16.mxu1 %v1349_v18  ;;  %v2271_v22 = vpop.permute.xlu1 %2270  ;;  %v2320_v18 = vld [vmem:[%s3349_s3 + $0x88] ss:$20 sps:$4 sm:$0xff]  }
 0x282   : > { %v982_v15 = vsel %vm317_vm6, %v971_v51, %v973_v61  ;;  %v2272_v46 = vunpack.i.l.bf16 %v2271_v22  ;;  %v2273_v49 = vunpack.i.h.bf16 %v2271_v22  ;;  %vm1702_vm6 = vcmask 523264  }
 0x283   : > { %1737 = vmatprep.subr.bf16.mxu0 %v982_v15 }
 0x284   : > { %1738 = vmatpush1.bf16.msra.mxu0 %v981_v31  ;;  %1819 = vmatpush1.bf16.msra.mxu1 %v1348_v38  ;;  %v1069_v5 = vsel %vm345_vm7, %v2272_v46, %v1047_v17  ;;  %v1071_v21 = vsel %vm345_vm7, %v2273_v49, %v1053_v29  ;;  %v2314_v17 = vld [vmem:[%s3349_s3 + $0x38] ss:$20 sps:$4 sm:$0xff]  }
 0x285   : > { %v1059_v37 = vpop.permute.xlu0 %1058  ;;  %v1055_v7 = vpop.permute.xlu1 %1054  ;;  %1739 = vmatprep.subr.bf16.mxu0 %v1070_v4 }
 0x286   : > { %v1072_v12 = vsel %vm345_vm7, %v1053_v29, %v1055_v7 }
 0x287   : > { %1821 = vmatmul.mubr.bf16.vlgmr.msra.gmra.mrb[0].mxu1 %v2293_v19 }
 0x288   : > { %1740 = vmatpush1.bf16.msra.mxu0 %v1069_v5  ;;  %1830 = vmatprep.mubr.bf16.mxu1 %v2296_v8 }
 0x289   : > { %v2276_v13 = vpop.permute.xlu0 %2275  ;;  %v1061_v14 = vpop.permute.xlu1 %1060  ;;  %1741 = vmatprep.subr.bf16.mxu0 %v1072_v12 }
 0x28a   : > { %v2277_v20 = vunpack.i.l.bf16 %v2276_v13  ;;  %v1074_v54 = vsel %vm345_vm7, %v1059_v37, %v1061_v14  ;;  %v2278_v11 = vunpack.i.h.bf16 %v2276_v13 }
 0x28c   : > { %1742 = vmatpush1.bf16.msra.mxu0 %v1071_v21  ;;  %v1073_v6 = vsel %vm345_vm7, %v2277_v20, %v1059_v37 }
 0x28d   : > { %v2281_v47 = vpop.permute.xlu0 %2280  ;;  %v1065_v34 = vpop.permute.xlu1 %1064  ;;  %1743 = vmatprep.subr.bf16.mxu0 %v1074_v54 }
 0x28e   : > { %v2282_v62 = vunpack.i.l.bf16 %v2281_v47  ;;  %v1075_v9 = vsel %vm345_vm7, %v2278_v11, %v1065_v34  ;;  %v2283_v3 = vunpack.i.h.bf16 %v2281_v47 }
 0x28f   : > { %1831 = vmatmul.mubr.bf16.gmra.mrb[4].mxu1 %v2298_v26 }
 0x290   : > { %1744 = vmatpush1.bf16.msra.mxu0 %v1073_v6  ;;  %1840 = vmatprep.mubr.bf16.mxu1 %v2302_v53 }
 0x291   : > { %v1067_v27 = vpop.permute.xlu0 %1066  ;;  %v1413_v28 = vpop.permute.xlu1 %1412 }
 0x292   : > { %v1076_v30 = vsel %vm345_vm7, %v1065_v34, %v1067_v27  ;;  %v1435_v1 = vsel %vm452_vm12, %v1413_v28, %v2282_v62 }
 0x293   : > { %1745 = vmatprep.subr.bf16.mxu0 %v1076_v30  ;;  %2100 = vmatprep.subr.bf16.mxu1 %v1435_v1 }
 0x294   : > { %1746 = vmatpush1.bf16.msra.mxu0 %v1075_v9 }
 0x295   : > { %v1419_v25 = vpop.permute.xlu0 %1418  ;;  %v1411_v2 = vpop.permute.xlu1 %1410  ;;  %1861 = vmatprep.subr.bf16.mxu0 %v1435_v1 }
 0x296   : > { %v1434_v39 = vsel %vm452_vm12, %v1411_v2, %v1413_v28  ;;  %v1437_v36 = vsel %vm452_vm12, %v1419_v25, %v2283_v3 }
 0x297   : > { %1748 = vmatmul.mubr.bf16.vlgmr.msra.gmra.mrb[16].mxu0 %v2299_v33  ;;  %2104 = vmatpush1.bf16.msra.mxu1 %v1434_v39 }
 0x298   : > { %1862 = vmatpush1.bf16.msra.mxu0 %v1434_v39  ;;  %2101 = vmatprep.subr.bf16.mxu1 %v1437_v36 }
 0x299   : > { %v1425_v23 = vpop.permute.xlu0 %1424  ;;  %v1417_v16 = vpop.permute.xlu1 %1416  ;;  %1863 = vmatprep.subr.bf16.mxu0 %v1437_v36  ;;  %1841 = vmatmul.mubr.bf16.gmra.mrb[8].mxu1 %v2304_v35 }
 0x29a   : > { %v1436_v51 = vsel %vm452_vm12, %v1417_v16, %v1419_v25  ;;  %1757 = vmatprep.mubr.bf16.mxu0 %v2305_v41  ;;  %1850 = vmatprep.mubr.bf16.mxu1 %v2308_v32 }
 0x29b   : > { %2105 = vmatpush1.bf16.msra.mxu1 %v1436_v51 }
 0x29c   : > { %1864 = vmatpush1.bf16.msra.mxu0 %v1436_v51 }
 0x29d   : > { %v1423_v56 = vpop.permute.xlu0 %1422  ;;  %v1427_v48 = vpop.permute.xlu1 %1426 }
 0x29e   : > { %v1438_v55 = vsel %vm452_vm12, %v1423_v56, %v1425_v23  ;;  %v1439_v42 = vsel %vm452_vm12, %v1425_v23, %v1427_v48 }
 0x29f   : > { %1758 = vmatmul.mubr.bf16.gmra.mrb[20].mxu0 %v2307_v52  ;;  %1865 = vmatprep.subr.bf16.mxu0 %v1439_v42 }
 0x2a0   : > { %2102 = vmatprep.subr.bf16.mxu1 %v1439_v42  ;;  %1866 = vmatpush1.bf16.msra.mxu0 %v1438_v55 }
 0x2a1   : > { %2106 = vmatpush1.bf16.msra.mxu1 %v1438_v55  ;;  %v1433_v63 = vpop.permute.xlu0 %1432  ;;  %v1431_v24 = vpop.permute.xlu1 %1430  ;;  %1767 = vmatprep.mubr.bf16.mxu0 %v2311_v57 }
 0x2a2   : > { %1851 = vmatmul.mubr.bf16.gmra.mrb[12].mxu1 %v2310_v58  ;;  %v1441_v45 = vsel %vm452_vm12, %v1431_v24, %v1433_v63 }
 0x2a3   : > { %1867 = vmatprep.subr.bf16.mxu0 %v1441_v45  ;;  %2103 = vmatprep.subr.bf16.mxu1 %v1441_v45 }
 0x2a4   : > { %1903 = vmatprep.mubr.bf16.mxu1 %v2394_v40 }
 0x2a5   : > { %v1429_v50 = vpop.permute.xlu1 %1428 }
 0x2a6   : > { %v1440_v29 = vsel %vm452_vm12, %v1429_v50, %v1431_v24 }
 0x2a7   : > { %1768 = vmatmul.mubr.bf16.gmra.mrb[24].mxu0 %v2313_v44  ;;  %2107 = vmatpush1.bf16.msra.mxu1 %v1440_v29 }
 0x2a8   : > { %1868 = vmatpush1.bf16.msra.mxu0 %v1440_v29  ;;  %1777 = vmatprep.mubr.bf16.mxu0 %v2315_v43 }
 0x2aa   : > { %2080 = vmatmul.mubr.msk.bf16.vlgmr.msra.gmra.mrb[4].mxu1 %vm1702_vm6, %v2314_v17 }
 0x2ab   : > { %1913 = vmatprep.mubr.bf16.mxu1 %v2394_v40 }
 0x2af   : > { %1778 = vmatmul.mubr.bf16.gmra.mrb[28].mxu0 %v2317_v0 }
 0x2b0   : > { %1893 = vmatprep.mubr.bf16.mxu0 %v2394_v40 }
 0x2b2   : > { %2081 = vmatmul.mubr.msk.bf16.gmra.mrb[8].mxu1 %vm1702_vm6, %v2318_v10  ;;  %v1565_v31 = vpop.permute.xlu0 %1564 }
 0x2b3   : > { %1923 = vmatprep.mubr.bf16.mxu1 %v2394_v40 }
 0x2b6   : > { %v1570_v4 = vpop.permute.xlu1 %1569  ;;  %v1575_v47 = vpop.permute.xlu0 %1574 }
 0x2b7   : > { %2079 = vmatmul.mubr.msk.bf16.vlgmr.msra.gmra.mrb[32].mxu0 %vm1702_vm6, %v2319_v59 }
 0x2ba   : > { %2082 = vmatmul.mubr.msk.bf16.gmra.mrb[12].mxu1 %vm1702_vm6, %v2320_v18  ;;  %v1580_v62 = vpop.permute.xlu1 %1579  ;;  %v1585_v51 = vpop.permute.xlu0 %1584 }
 0x2be   : > { %v1590_v48 = vpop.permute.xlu1 %1589 }
 0x35a   : > { %v1822_v60 = vpop.f32.mrb[0].mxu1 }
 0x35b   : > { %v1824_v61 = vpop.f32.mrb[1].mxu1 }
 0x35c   : > { %v1826_v22 = vpop.f32.mrb[2].mxu1 }
 0x35d   : > { %v1828_v15 = vpop.f32.mrb[3].mxu1 }
 0x36a   : > { %v1749_v46 = vpop.f32.mrb[16].mxu0 }
 0x36b   : > { %v1750_v38 = vadd.f32 %v1749_v46, %v1565_v31  ;;  %v1751_v19 = vpop.f32.mrb[17].mxu0 }
 0x36c   : > { %v1752_v8 = vadd.f32 %v1751_v19, %v1565_v31  ;;  %v1753_v37 = vpop.f32.mrb[18].mxu0 }
 0x36d   : > { %v1754_v7 = vadd.f32 %v1753_v37, %v1570_v4  ;;  %v1755_v40 = vpop.f32.mrb[19].mxu0  ;;  %v3260_v49 = vadd.f32 %v1822_v60, %v1750_v38  ;;  %v1600_v38 = vpop.permute.xlu1 %1599 }
 0x36e   : > { %v1756_v5 = vadd.f32 %v1755_v40, %v1570_v4  ;;  %v3262_v12 = vadd.f32 %v1824_v61, %v1752_v8 }
 0x36f   : > { %v3264_v13 = vadd.f32 %v1826_v22, %v1754_v7  ;;  %v1595_v22 = vpop.permute.xlu0 %1594 }
 0x370   : > { %v3266_v14 = vadd.f32 %v1828_v15, %v1756_v5 }
 0x372   : > { %v1759_v20 = vpop.f32.mrb[20].mxu0 }
 0x373   : > { %v1761_v21 = vpop.f32.mrb[21].mxu0  ;;  %v1760_v11 = vadd.f32 %v1759_v20, %v1575_v47 }
 0x374   : > { %v1763_v26 = vpop.f32.mrb[22].mxu0  ;;  %v1762_v27 = vadd.f32 %v1761_v21, %v1575_v47 }
 0x375   : > { %v1765_v54 = vpop.f32.mrb[23].mxu0  ;;  %v1764_v1 = vadd.f32 %v1763_v26, %v1580_v62 }
 0x376   : > { %v1766_v3 = vadd.f32 %v1765_v54, %v1580_v62 }
 0x37a   : > { %v1769_v53 = vpop.f32.mrb[24].mxu0 }
 0x37b   : > { %v1771_v34 = vpop.f32.mrb[25].mxu0  ;;  %v1770_v57 = vadd.f32 %v1769_v53, %v1585_v51 }
 0x37c   : > { %v1773_v6 = vpop.f32.mrb[26].mxu0  ;;  %v1772_v42 = vadd.f32 %v1771_v34, %v1585_v51 }
 0x37d   : > { %v1775_v28 = vpop.f32.mrb[27].mxu0  ;;  %v1905_v30 = vpop.f32.mrb[4].mxu1  ;;  %v1774_v24 = vadd.f32 %v1773_v6, %v1590_v48 }
 0x37e   : > { %v2121_v9 = vadd.f32 %v1905_v30, %v1760_v11  ;;  %v1907_v33 = vpop.f32.mrb[5].mxu1  ;;  %v1776_v43 = vadd.f32 %v1775_v28, %v1590_v48 }
 0x37f   : > { %v2123_v25 = vadd.f32 %v1907_v33, %v1762_v27  ;;  %v1909_v2 = vpop.f32.mrb[6].mxu1 }
 0x380   : > { %v1938_v35 = vmax.f32 %v2121_v9, 0.0  ;;  %v2125_v39 = vadd.f32 %v1909_v2, %v1764_v1  ;;  %v1911_v36 = vpop.f32.mrb[7].mxu1 }
 0x381   : > { %v1939_v41 = vmax.f32 %v2123_v25, 0.0  ;;  %v2127_v32 = vadd.f32 %v1911_v36, %v1766_v3 }
 0x382   : > { %1954 = vst [vmem:[%s3271_s9 + $0x20] sm:$0xff] %v1938_v35  ;;  %v1940_v23 = vmax.f32 %v2125_v39, 0.0  ;;  %v1779_v16 = vpop.f32.mrb[28].mxu0 }
 0x383   : > { %1955 = vst [vmem:[%s3271_s9 + $0x28] sm:$0xff] %v1939_v41  ;;  %v1941_v52 = vmax.f32 %v2127_v32, 0.0  ;;  %v1781_v56 = vpop.f32.mrb[29].mxu0  ;;  %v1780_v19 = vadd.f32 %v1779_v16, %v1595_v22 }
 0x384   : > { %1956 = vst [vmem:[%s3271_s9 + $0x30] sm:$0xff] %v1940_v23  ;;  %v1783_v55 = vpop.f32.mrb[30].mxu0  ;;  %v1782_v37 = vadd.f32 %v1781_v56, %v1595_v22 }
 0x385   : > { %1957 = vst [vmem:[%s3271_s9 + $0x38] sm:$0xff] %v1941_v52  ;;  %v1785_v58 = vpop.f32.mrb[31].mxu0  ;;  %v1915_v63 = vpop.f32.mrb[8].mxu1  ;;  %v1784_v21 = vadd.f32 %v1783_v55, %v1600_v38 }
 0x386   : > { %v2129_v45 = vadd.f32 %v1915_v63, %v1770_v57  ;;  %v1917_v44 = vpop.f32.mrb[9].mxu1 }
 0x387   : > { %v2131_v50 = vadd.f32 %v1917_v44, %v1772_v42  ;;  %v1919_v29 = vpop.f32.mrb[10].mxu1 }
 0x388   : > { %v1942_v17 = vmax.f32 %v2129_v45, 0.0  ;;  %v2133_v0 = vadd.f32 %v1919_v29, %v1774_v24  ;;  %v1921_v10 = vpop.f32.mrb[11].mxu1 }
 0x389   : > { %v1943_v59 = vmax.f32 %v2131_v50, 0.0  ;;  %v2135_v18 = vadd.f32 %v1921_v10, %v1776_v43 }
 0x38a   : > { %1958 = vst [vmem:[%s3271_s9 + $0x40] sm:$0xff] %v1942_v17  ;;  %v1944_v60 = vmax.f32 %v2133_v0, 0.0  ;;  %v1895_v61 = vpop.f32.mrb[32].mxu0 }
 0x38b   : > { %1959 = vst [vmem:[%s3271_s9 + $0x48] sm:$0xff] %v1943_v59  ;;  %v1945_v15 = vmax.f32 %v2135_v18, 0.0  ;;  %v1896_v31 = vadd.f32 %v1895_v61, %v3260_v49  ;;  %v1897_v46 = vpop.f32.mrb[33].mxu0 }
 0x38c   : > { %1960 = vst [vmem:[%s3271_s9 + $0x50] sm:$0xff] %v1944_v60  ;;  %v1898_v4 = vadd.f32 %v1897_v46, %v3262_v12  ;;  %v1899_v8 = vpop.f32.mrb[34].mxu0  ;;  %v1786_v12 = vadd.f32 %v1785_v58, %v1600_v38 }
 0x38d   : > { %1961 = vst [vmem:[%s3271_s9 + $0x58] sm:$0xff] %v1945_v15  ;;  %v1934_v7 = vmax.f32 %v1896_v31, 0.0  ;;  %v1900_v40 = vadd.f32 %v1899_v8, %v3264_v13  ;;  %v1901_v5 = vpop.f32.mrb[35].mxu0  ;;  %v1925_v20 = vpop.f32.mrb[12].mxu1 }
 0x38e   : > { %v1935_v49 = vmax.f32 %v1898_v4, 0.0  ;;  %v1902_v26 = vadd.f32 %v1901_v5, %v3266_v14  ;;  %v2137_v54 = vadd.f32 %v1925_v20, %v1780_v19  ;;  %v1927_v53 = vpop.f32.mrb[13].mxu1 }
 0x38f   : > { %1950 = vst [vmem:[%s3271_s9] sm:$0xff] %v1934_v7  ;;  %v1936_v47 = vmax.f32 %v1900_v40, 0.0  ;;  %v2139_v34 = vadd.f32 %v1927_v53, %v1782_v37  ;;  %v1929_v62 = vpop.f32.mrb[14].mxu1 }
 0x390   : > { %1951 = vst [vmem:[%s3271_s9 + $0x8] sm:$0xff] %v1935_v49  ;;  %v1937_v13 = vmax.f32 %v1902_v26, 0.0  ;;  %v1946_v11 = vmax.f32 %v2137_v54, 0.0  ;;  %v2141_v6 = vadd.f32 %v1929_v62, %v1784_v21  ;;  %v1931_v27 = vpop.f32.mrb[15].mxu1 }
 0x391   : > { %1952 = vst [vmem:[%s3271_s9 + $0x10] sm:$0xff] %v1936_v47  ;;  %v1947_v14 = vmax.f32 %v2139_v34, 0.0  ;;  %v2143_v28 = vadd.f32 %v1931_v27, %v1786_v12 }
 0x392   : > { %1953 = vst [vmem:[%s3271_s9 + $0x18] sm:$0xff] %v1937_v13  ;;  %1962 = vst [vmem:[%s3271_s9 + $0x60] sm:$0xff] %v1946_v11  ;;  %v1948_v30 = vmax.f32 %v2141_v6, 0.0 }
 0x393   : > { %1963 = vst [vmem:[%s3271_s9 + $0x68] sm:$0xff] %v1947_v14  ;;  %v1949_v1 = vmax.f32 %v2143_v28, 0.0 }
 0x394   : > { %1964 = vst [vmem:[%s3271_s9 + $0x70] sm:$0xff] %v1948_v30 }
 0x395   : > { %1965 = vst [vmem:[%s3271_s9 + $0x78] sm:$0xff] %v1949_v1 }
 0x396   : > { %2334 = shalt.err (!%p2331_p3)
}
 0x397   : > { %s2335_s26 = scalar_lea.hbm %s3295_s22, 2048  ;;  %s2339_s7 = scalar_lea.hbm %s3351_s5, 4096 }
 0x398   : > { %p2336_p4 = scmp.ne.s32.totalorder %s3295_s22, %s2335_s26  ;;  %p2340_p9 = scmp.lt.u32.totalorder %s3295_s22, %s3351_s5 }
 0x399   : > { %p2341_p10 = scmp.lt.u32.totalorder %s2339_s7, %s2335_s26  ;;  %p2343_p12 = scmp.lt.u32.totalorder %s2335_s26, %s3295_s22 }
 0x39a   : > { %p2337_p7 = pnand %p2336_p4, %p2466_p5 }
 0x39b   : > { %p2342_p11 = por %p2341_p10, %p2340_p9 }
 0x39c   : > { %p2338_p8 = pneg %p2337_p7 }
 0x39d   : > { %p2344_p13 = por %p2343_p12, %p2342_p11 }
 0x39f   : > { %p2345_p0 = pnand %p2344_p13, %p2338_p8 }
 0x3a1   : > { %2348 = shalt.err (!%p2345_p0)
}
 0x3a2   : > { %s2397_s16 = smov 256  }
 0x3a3   : > { %2156 = dma.vmem_to_hbm [thread:$0]  (%p2466_p5), %s3298_s12, 2048, %s3295_s22, %s3304_s15, %s2397_s16, %s2397_s16, %s2389_s14  }
 0x3a4 PF: > { %p2162_p1 = scmp.ge.s32.totalorder %s2383_s21, 2  ;;  %s1995_s13 = sand.u32 1, %s2371_s18  }
 0x3a5   : > { %s1996_s11 = scalar_lea.sflag [#allocation6], %s1995_s13 }
 0x3a6   : > { %p2159_p2 = pnand %p2162_p1, %p2470_p6 }
 0x3a8   : > { %2366 = dma.done.wait (!%p2159_p2), %s1996_s11, 2048  }
 0x3a9   : > { %2368 = vsyncadd (!%p2159_p2), %s1996_s11, 4294965248  ;;  %p15_p3 = scmp.ge.s32.totalorder %s2453_s24, 4   ;;  %s3362_s18 = smov %s2375_s19 }
 0x3aa   : > { %s3363_s19 = smov %s2379_s20  ;;  %s3364_s20 = smov %s2464_s27 }
 0x3ab   : > { %s3365_s21 = smov %s2453_s24  ;;  %17 = sbr.rel (!%p15_p3) target bundleno = 3 (0x3), region = 75 }
 0x3b2   :  { %2001 = vsyncpa [#allocation6], 1 }
 0x3b3   :  { %2003 = vsyncpa [#allocation6 + $0x1], 1 }

</bundles_post_ra>
